<compile_context>
chip_gen: v5e
topology: v5e:2x2
jax: 0.10.0
libtpu: 0.0.40
codegen_flags: <defaults>
</compile_context>

<pallas_src>
import numpy as np
import jax
import jax.numpy as jnp
from jax.experimental import pallas as pl
from jax.experimental.pallas import tpu as pltpu


# ------------------------------ host helpers ---------------------------------
def _dft_pack(n):
    """Centered orthonormal DFT matrix A (fft2c along one axis == A @ x).

    A = fftshift . DFT(ortho) . ifftshift is symmetric and unitary for even n,
    so ifft2c uses conj(A) and right-multiplication by A equals the DFT along
    the lane axis.  Shipped as a 2-slice [re, im] bf16 pack; the Karatsuba
    sum/difference slices are formed in-kernel.
    """
    idx = np.arange(n)
    F = np.exp(-2j * np.pi * np.outer(idx, idx) / n) / np.sqrt(n)
    Pf = np.fft.fftshift(np.eye(n), axes=0)
    Pi = np.fft.ifftshift(np.eye(n), axes=0)
    A = Pf @ F @ Pi
    pack = np.stack([A.real, A.imag], axis=0).astype(np.float32)
    return jnp.asarray(pack, dtype=jnp.bfloat16)


def _pick_chunk(coils, max_chunk):
    """Largest divisor of `coils` that is <= max_chunk."""
    best = 1
    for d in range(1, coils + 1):
        if coils % d == 0 and d <= max_chunk:
            best = d
    return best


def _pick_vmem_limit(chunk, H, W):
    """Per-generation VMEM limit: blocks (double-buffered) + intermediates."""
    bf2, f4 = 2, 4
    blocks = (2 * chunk * H * W * bf2          # sens block (bf16)
              + 2 * chunk * W * H * bf2        # ref block (bf16, pre-transposed)
              + 2 * H * W * bf2                # image block
              + 2 * H * H * bf2 + 2 * W * W * bf2   # DFT packs
              + W * f4)                        # DC coefficient column
    resident = 2 * blocks + 2 * (2 * H * W * f4)        # double-buffered in + out
    inter = 12 * chunk * H * W * f4 + 4 * (H * H + W * W) * bf2
    limit = resident + inter + (8 << 20)
    cap = 100 << 20                            # fine for v5e/v6e (128 MiB physical)
    try:                                       # cap below physical on v7x (64 MiB)
        cap = min(cap, int(pltpu.get_tpu_info().vmem_capacity_bytes) - (8 << 20))
    except Exception:
        pass
    return int(max(32 << 20, min(limit, cap)))


# --------------------------- in-kernel helpers --------------------------------
def _karatsuba_rmm(xr, xi, m_re, m_im, m_pm, conj):
    """Complex right matmul (xr + i*xi) @ (m_re [+/-] i*m_im) on the MXU.

    3 bf16 matmuls with f32 accumulation (Karatsuba).  m_pm must hold
    m_re + m_im when conj=False and m_re - m_im when conj=True.
    """
    xr_b = xr.astype(jnp.bfloat16)
    xi_b = xi.astype(jnp.bfloat16)
    xs_b = xr_b + xi_b
    t1 = jnp.dot(xr_b, m_re, preferred_element_type=jnp.float32)
    t2 = jnp.dot(xi_b, m_im, preferred_element_type=jnp.float32)
    t3 = jnp.dot(xs_b, m_pm, preferred_element_type=jnp.float32)
    if conj:
        return t1 + t2, t3 - t1 + t2
    return t1 - t2, t3 - t1 - t2


# -------------------------------- kernel --------------------------------------
def hfgnet_block_kernel(dcm_ref, fh_ref, fw_ref, img_ref, sens_ref, ref_ref,
                        out_ref):
    _, chunk, H, W = sens_ref.shape            # sens block: (2, chunk, H, W)

    # TODO(synk): self.model (pluggable regularizer, e.g. a U-Net) is an
    # external module handed to __init__; it is treated as identity here.

    # init the resident cross-chunk accumulator (the output block itself)
    @pl.when(pl.program_id(1) == 0)
    def _init():
        out_ref[...] = jnp.zeros_like(out_ref)

    # Karatsuba matrix slices formed in-kernel from the 2-slice [re, im] pack.
    fh_re, fh_im = fh_ref[0], fh_ref[1]
    fw_re, fw_im = fw_ref[0], fw_ref[1]
    fh_sum, fh_dif = fh_re + fh_im, fh_re - fh_im
    fw_sum, fw_dif = fw_re + fw_im, fw_re - fw_im

    xr = img_ref[0].astype(jnp.float32)        # (H, W)
    xi = img_ref[1].astype(jnp.float32)
    sr = sens_ref[0].astype(jnp.float32)       # (chunk, H, W)
    si = sens_ref[1].astype(jnp.float32)

    # sens_expand: complex_mul(image, sens_maps) for this coil chunk.
    yr = (xr[None] * sr - xi[None] * si).reshape(chunk * H, W)
    yi = (xr[None] * si + xi[None] * sr).reshape(chunk * H, W)

    # fft2c stage 1: centered DFT along W.  Coils*H folded into the matmul M
    # dimension; A_W stays stationary in the MXU.
    k1r, k1i = _karatsuba_rmm(yr, yi, fw_re, fw_im, fw_sum, conj=False)

    # Batched minor transpose (chunk, H, W) -> (chunk, W, H): because A_H is
    # symmetric, the H-axis DFT also becomes a stationary-RHS right matmul on
    # the transposed data (no broadcast copies, no batched einsum).
    k1r = jnp.swapaxes(k1r.reshape(chunk, H, W), -1, -2).reshape(chunk * W, H)
    k1i = jnp.swapaxes(k1i.reshape(chunk, H, W), -1, -2).reshape(chunk * W, H)

    # fft2c stage 2: centered DFT along H (k-space now held transposed).
    k2r = _karatsuba_rmm(k1r, k1i, fh_re, fh_im, fh_sum, conj=False)
    k2r, k2i = k2r[0].reshape(chunk, W, H), k2r[1].reshape(chunk, W, H)

    # Fused soft data consistency:  k -= (dc_weight^2 * mask) * (k - ref).
    # k-space is transposed, so the mask scale is a per-row column (1, W, 1)
    # and ref is shipped pre-transposed as (chunk, W, H) planes.
    a = dcm_ref[...][None]                     # (1, W, 1)
    rr = ref_ref[0].astype(jnp.float32)        # (chunk, W, H)
    ri = ref_ref[1].astype(jnp.float32)
    k2r = k2r - a * (k2r - rr)
    k2i = k2i - a * (k2i - ri)

    # ifft2c stage 1: inverse DFT along H (conj(A_H)), still transposed.
    u1r, u1i = _karatsuba_rmm(k2r.reshape(chunk * W, H),
                              k2i.reshape(chunk * W, H),
                              fh_re, fh_im, fh_dif, conj=True)

    # Transpose back to (chunk, H, W).
    u1r = jnp.swapaxes(u1r.reshape(chunk, W, H), -1, -2).reshape(chunk * H, W)
    u1i = jnp.swapaxes(u1i.reshape(chunk, W, H), -1, -2).reshape(chunk * H, W)

    # ifft2c stage 2: inverse DFT along W (conj(A_W)).
    ir, ii = _karatsuba_rmm(u1r, u1i, fw_re, fw_im, fw_dif, conj=True)
    ir = ir.reshape(chunk, H, W)
    ii = ii.reshape(chunk, H, W)

    # sens_reduce: sum_c image * conj(sens), accumulated over coil chunks.
    out_ref[0] += jnp.sum(ir * sr + ii * si, axis=0)
    out_ref[1] += jnp.sum(ii * sr - ir * si, axis=0)


# ------------------------------ host wrapper -----------------------------------
def hfgnet_block_forward(input_image, ref_kspace, mask, sens_maps, dc_weight,
                         *, max_coil_chunk=4):
    """Pallas implementation of HFGNetBlock.forward (self.model == identity).

    input_image: (B, 1, H, W, 2) f32
    ref_kspace : (B, C, H, W, 2) f32
    mask       : (1, 1, 1, W, 1) bool
    sens_maps  : (B, C, H, W, 2) f32
    dc_weight  : (1,) f32
    returns    : (B, 1, H, W, 2) f32
    """
    B, C, H, W, _ = ref_kspace.shape
    # NOTE: H, W should ideally be multiples of 128 (256 on v6e/v7x) for full
    # MXU occupancy and unmasked lane-dense output stores; multiples of 8 are
    # required for free leading-dim reshapes and DFT-matrix symmetry (even n).
    assert H % 8 == 0 and W % 8 == 0, "H and W must be multiples of 8"

    # ---- coil grouping / chunking ------------------------------------------
    groups = 2 if (B == 1 and C % 2 == 0) else 1   # B==1: keep both v7x TCs busy
    cpg = C // groups                              # coils per group
    chunk = _pick_chunk(cpg, max_coil_chunk)       # coils per grid step
    kpg = cpg // chunk                             # chunk steps per group

    # ---- pack inputs (real/imag as a leading axis; bf16 for DMA) ------------
    img_p = jnp.moveaxis(input_image[:, 0], -1, 1).astype(jnp.bfloat16)   # (B,2,H,W)
    sens_p = jnp.moveaxis(sens_maps, -1, 1).astype(jnp.bfloat16)          # (B,2,C,H,W)
    # reference k-space ships pre-transposed (..., W, H): the soft-DC is applied
    # while k-space is held in the transposed orientation inside the kernel.
    ref_p = jnp.swapaxes(jnp.moveaxis(ref_kspace, -1, 1), -1, -2).astype(jnp.bfloat16)

    # fused soft-DC coefficient column: a = dc_weight^2 * mask   (the module
    # applies dc_weight twice:  k - w * (w * where(mask, k - ref, 0)) ).
    w = jnp.asarray(dc_weight, jnp.float32).reshape(-1)[0]
    mask_col = mask[0, 0, 0, :, 0].astype(jnp.float32)                    # (W,)
    dcm = ((w * w) * mask_col).reshape(W, 1)

    fh = _dft_pack(H)                                                     # (2,H,H) bf16
    fw = _dft_pack(W)                                                     # (2,W,W) bf16

    # ---- index maps ----------------------------------------------------------
    if groups == 1:
        img_map = lambda p, k: (p, 0, 0, 0)
        coil_map = lambda p, k: (p, 0, k, 0, 0)
    else:
        g, kk = groups, kpg
        img_map = lambda p, k: (p // g, 0, 0, 0)
        coil_map = lambda p, k: (p // g, 0, (p % g) * kk + k, 0, 0)
    out_map = lambda p, k: (p, 0, 0, 0)

    out = pl.pallas_call(
        hfgnet_block_kernel,
        out_shape=jax.ShapeDtypeStruct((B * groups, 2, H, W), jnp.float32),
        grid_spec=pltpu.PrefetchScalarGridSpec(
            num_scalar_prefetch=0,
            grid=(B * groups, kpg),                   # (parallel, coil-chunk)
            in_specs=[
                pl.BlockSpec((W, 1), lambda p, k: (0, 0)),          # w^2 * mask
                pl.BlockSpec((2, H, H), lambda p, k: (0, 0, 0)),    # A_H [re, im]
                pl.BlockSpec((2, W, W), lambda p, k: (0, 0, 0)),    # A_W [re, im]
                pl.BlockSpec((None, 2, H, W), img_map),             # image
                pl.BlockSpec((None, 2, chunk, H, W), coil_map),     # sens chunk
                pl.BlockSpec((None, 2, chunk, W, H), coil_map),     # ref chunk (transposed)
            ],
            out_specs=pl.BlockSpec((None, 2, H, W), out_map),
        ),
        compiler_params=pltpu.CompilerParams(
            dimension_semantics=("parallel", "arbitrary"),
            vmem_limit_bytes=_pick_vmem_limit(chunk, H, W),
        ),
    )(dcm, fh, fw, img_p, sens_p, ref_p)

    if groups > 1:                                   # sum per-group partials
        out = out.reshape(B, groups, 2, H, W).sum(axis=1)
    # (B, 2, H, W) -> (B, 1, H, W, 2)
    return jnp.moveaxis(out, 1, -1)[:, None]


# ---------------- pure-JAX reference (jnp.fft) for validation -----------------
def _fft2c(x):
    return jnp.fft.fftshift(
        jnp.fft.fft2(jnp.fft.ifftshift(x, axes=(-2, -1)), axes=(-2, -1),
                     norm="ortho"), axes=(-2, -1))


def _ifft2c(x):
    return jnp.fft.fftshift(
        jnp.fft.ifft2(jnp.fft.ifftshift(x, axes=(-2, -1)), axes=(-2, -1),
                      norm="ortho"), axes=(-2, -1))


def hfgnet_block_reference(input_image, ref_kspace, mask, sens_maps, dc_weight):
    img = input_image[..., 0] + 1j * input_image[..., 1]     # (B,1,H,W)
    sens = sens_maps[..., 0] + 1j * sens_maps[..., 1]        # (B,C,H,W)
    refk = ref_kspace[..., 0] + 1j * ref_kspace[..., 1]      # (B,C,H,W)
    w = dc_weight[0]

    k_up = _fft2c(img * sens)                                # sens_expand
    m = mask[..., 0]                                         # (1,1,1,W)
    soft_dc = jnp.where(m, k_up - refk, 0.0) * w
    k_corr = k_up - w * soft_dc
    img_c = (_ifft2c(k_corr) * jnp.conj(sens)).sum(axis=1, keepdims=True)
    return jnp.stack([img_c.real, img_c.imag], axis=-1).astype(jnp.float32)


if __name__ == "__main__":
    B, C, H, W = 2, 8, 16, 16
    key = jax.random.PRNGKey(0)
    k1, k2, k3 = jax.random.split(key, 3)

    input_image = jax.random.normal(k1, (B, 1, H, W, 2), dtype=jnp.float32)
    ref_kspace = jax.random.normal(k2, (B, C, H, W, 2), dtype=jnp.float32)
    sens_maps = jax.random.normal(k3, (B, C, H, W, 2), dtype=jnp.float32)

    # deterministic undersampling mask over k-space columns (fastMRI style)
    cols = np.zeros(W, dtype=bool)
    cols[::4] = True
    cols[W // 2 - 2: W // 2 + 2] = True                      # fully-sampled center
    mask = jnp.asarray(cols.reshape(1, 1, 1, W, 1))
    dc_weight = jnp.ones((1,), dtype=jnp.float32)            # nn.Parameter(torch.ones(1))

    ref = jax.block_until_ready(
        hfgnet_block_reference(input_image, ref_kspace, mask, sens_maps, dc_weight))
    ref_np = np.asarray(ref, dtype=np.float64)

    # B == 2: batch axis parallel, coil-chunk axis (2 steps of 4 coils) arbitrary.
    out = hfgnet_block_forward(input_image, ref_kspace, mask, sens_maps,
                               dc_weight, max_coil_chunk=4)
    out = jax.block_until_ready(out)
    assert out.shape == (B, 1, H, W, 2), out.shape
    out_np = np.asarray(out, dtype=np.float64)
    rel_err = np.linalg.norm(out_np - ref_np) / np.linalg.norm(ref_np)
    # bf16 inputs + bf16 MXU operands (f32 accumulation) across 4 DFT matmul
    # stages give ~1-2e-2 relative L2 error vs the f32 jnp.fft reference.
    assert rel_err < 3e-2, f"relative L2 error too large (B=2 path): {rel_err}"

    # B == 1: coils split into 2 groups along the *parallel* axis (both v7x
    # TensorCores busy at inference batch size 1), 2 chunk steps per group.
    out1 = hfgnet_block_forward(input_image[:1], ref_kspace[:1], mask,
                                sens_maps[:1], dc_weight, max_coil_chunk=2)
    out1 = jax.block_until_ready(out1)
    out1_np = np.asarray(out1, dtype=np.float64)
    rel_err1 = (np.linalg.norm(out1_np - ref_np[:1])
                / np.linalg.norm(ref_np[:1]))
    assert rel_err1 < 3e-2, f"relative L2 error too large (B=1 path): {rel_err1}"

    print("KERNEL_OK")
</pallas_src>

<mosaic_0001>
module attributes {stable_mosaic.version = 11 : i64} {
  func.func @hfgnet_block_kernel(%arg0: i32, %arg1: i32, %arg2: memref<16x1xf32, #tpu.memory_space<vmem>>, %arg3: memref<2x16x16xbf16, #tpu.memory_space<vmem>>, %arg4: memref<2x16x16xbf16, #tpu.memory_space<vmem>>, %arg5: memref<1x2x16x16xbf16, #tpu.memory_space<vmem>>, %arg6: memref<1x2x4x16x16xbf16, #tpu.memory_space<vmem>>, %arg7: memref<1x2x4x16x16xbf16, #tpu.memory_space<vmem>>, %arg8: memref<1x2x16x16xf32, #tpu.memory_space<vmem>>) attributes {dimension_semantics = [#tpu.dimension_semantics<parallel>, #tpu.dimension_semantics<arbitrary>], iteration_bounds = array<i64: 2, 2>, scalar_prefetch = 0 : i64, scratch_operands = 0 : i64, tpu.core_type = #tpu.core_type<tc>, window_params = [{pipeline_mode = #tpu.pipeline_mode<synchronous>, transform_indices = @transform_0, window_bounds = array<i64: 16, 1>}, {pipeline_mode = #tpu.pipeline_mode<synchronous>, transform_indices = @transform_1, window_bounds = array<i64: 2, 16, 16>}, {pipeline_mode = #tpu.pipeline_mode<synchronous>, transform_indices = @transform_2, window_bounds = array<i64: 2, 16, 16>}, {transform_indices = @transform_3, window_bounds = array<i64: 1, 2, 16, 16>}, {transform_indices = @transform_4, window_bounds = array<i64: 1, 2, 4, 16, 16>}, {transform_indices = @transform_5, window_bounds = array<i64: 1, 2, 4, 16, 16>}, {transform_indices = @transform_6, window_bounds = array<i64: 1, 2, 16, 16>}]} {
    %c0_i32 = arith.constant 0 : i32
    %0 = arith.cmpi eq, %arg1, %c0_i32 : i32
    %1 = arith.extui %0 : i1 to i32
    %c0_i32_0 = arith.constant 0 : i32
    %2 = arith.cmpi ne, %1, %c0_i32_0 : i32
    scf.if %2 {
      %cst_70 = arith.constant 0.000000e+00 : f32
      %133 = vector.broadcast %cst_70 : f32 to vector<2x16x16xf32>
      %c0_71 = arith.constant 0 : index
      %c0_72 = arith.constant 0 : index
      %c0_73 = arith.constant 0 : index
      %c0_74 = arith.constant 0 : index
      %134 = vector.load %arg8[%c0_71, %c0_72, %c0_73, %c0_74] : memref<1x2x16x16xf32, #tpu.memory_space<vmem>>, vector<1x2x16x16xf32>
      %135 = vector.shape_cast %134 : vector<1x2x16x16xf32> to vector<2x16x16xf32>
      %136 = vector.shape_cast %133 : vector<2x16x16xf32> to vector<1x2x16x16xf32>
      tpu.vector_store %arg8[%c0_71, %c0_72, %c0_73, %c0_74], %136 {strides = array<i32>} : memref<1x2x16x16xf32, #tpu.memory_space<vmem>>, vector<1x2x16x16xf32>,
    } else {
    }
    %c0 = arith.constant 0 : index
    %c0_1 = arith.constant 0 : index
    %c0_2 = arith.constant 0 : index
    %3 = vector.load %arg3[%c0, %c0_1, %c0_2] : memref<2x16x16xbf16, #tpu.memory_space<vmem>>, vector<1x16x16xbf16>
    %4 = vector.shape_cast %3 : vector<1x16x16xbf16> to vector<16x16xbf16>
    %c1 = arith.constant 1 : index
    %c0_3 = arith.constant 0 : index
    %c0_4 = arith.constant 0 : index
    %5 = vector.load %arg3[%c1, %c0_3, %c0_4] : memref<2x16x16xbf16, #tpu.memory_space<vmem>>, vector<1x16x16xbf16>
    %6 = vector.shape_cast %5 : vector<1x16x16xbf16> to vector<16x16xbf16>
    %c0_5 = arith.constant 0 : index
    %c0_6 = arith.constant 0 : index
    %c0_7 = arith.constant 0 : index
    %7 = vector.load %arg4[%c0_5, %c0_6, %c0_7] : memref<2x16x16xbf16, #tpu.memory_space<vmem>>, vector<1x16x16xbf16>
    %8 = vector.shape_cast %7 : vector<1x16x16xbf16> to vector<16x16xbf16>
    %c1_8 = arith.constant 1 : index
    %c0_9 = arith.constant 0 : index
    %c0_10 = arith.constant 0 : index
    %9 = vector.load %arg4[%c1_8, %c0_9, %c0_10] : memref<2x16x16xbf16, #tpu.memory_space<vmem>>, vector<1x16x16xbf16>
    %10 = vector.shape_cast %9 : vector<1x16x16xbf16> to vector<16x16xbf16>
    %11 = arith.addf %4, %6 : vector<16x16xbf16>
    %12 = arith.subf %4, %6 : vector<16x16xbf16>
    %13 = arith.addf %8, %10 : vector<16x16xbf16>
    %14 = arith.subf %8, %10 : vector<16x16xbf16>
    %c0_11 = arith.constant 0 : index
    %c0_12 = arith.constant 0 : index
    %c0_13 = arith.constant 0 : index
    %c0_14 = arith.constant 0 : index
    %15 = vector.load %arg5[%c0_11, %c0_12, %c0_13, %c0_14] : memref<1x2x16x16xbf16, #tpu.memory_space<vmem>>, vector<1x1x16x16xbf16>
    %16 = vector.shape_cast %15 : vector<1x1x16x16xbf16> to vector<16x16xbf16>
    %17 = arith.extf %16 : vector<16x16xbf16> to vector<16x16xf32>
    %c0_15 = arith.constant 0 : index
    %c1_16 = arith.constant 1 : index
    %c0_17 = arith.constant 0 : index
    %c0_18 = arith.constant 0 : index
    %18 = vector.load %arg5[%c0_15, %c1_16, %c0_17, %c0_18] : memref<1x2x16x16xbf16, #tpu.memory_space<vmem>>, vector<1x1x16x16xbf16>
    %19 = vector.shape_cast %18 : vector<1x1x16x16xbf16> to vector<16x16xbf16>
    %20 = arith.extf %19 : vector<16x16xbf16> to vector<16x16xf32>
    %c0_19 = arith.constant 0 : index
    %c0_20 = arith.constant 0 : index
    %c0_21 = arith.constant 0 : index
    %c0_22 = arith.constant 0 : index
    %c0_23 = arith.constant 0 : index
    %21 = vector.load %arg6[%c0_19, %c0_20, %c0_21, %c0_22, %c0_23] : memref<1x2x4x16x16xbf16, #tpu.memory_space<vmem>>, vector<1x1x4x16x16xbf16>
    %22 = vector.shape_cast %21 : vector<1x1x4x16x16xbf16> to vector<4x16x16xbf16>
    %23 = arith.extf %22 : vector<4x16x16xbf16> to vector<4x16x16xf32>
    %c0_24 = arith.constant 0 : index
    %c1_25 = arith.constant 1 : index
    %c0_26 = arith.constant 0 : index
    %c0_27 = arith.constant 0 : index
    %c0_28 = arith.constant 0 : index
    %24 = vector.load %arg6[%c0_24, %c1_25, %c0_26, %c0_27, %c0_28] : memref<1x2x4x16x16xbf16, #tpu.memory_space<vmem>>, vector<1x1x4x16x16xbf16>
    %25 = vector.shape_cast %24 : vector<1x1x4x16x16xbf16> to vector<4x16x16xbf16>
    %26 = arith.extf %25 : vector<4x16x16xbf16> to vector<4x16x16xf32>
    %27 = vector.shape_cast %17 : vector<16x16xf32> to vector<1x16x16xf32>
    %28 = vector.broadcast %27 : vector<1x16x16xf32> to vector<4x16x16xf32>
    %29 = arith.mulf %28, %23 : vector<4x16x16xf32>
    %30 = vector.shape_cast %20 : vector<16x16xf32> to vector<1x16x16xf32>
    %31 = vector.broadcast %30 : vector<1x16x16xf32> to vector<4x16x16xf32>
    %32 = arith.mulf %31, %26 : vector<4x16x16xf32>
    %33 = arith.subf %29, %32 : vector<4x16x16xf32>
    %34 = vector.shape_cast %33 : vector<4x16x16xf32> to vector<64x16xf32>
    %35 = vector.shape_cast %17 : vector<16x16xf32> to vector<1x16x16xf32>
    %36 = vector.broadcast %35 : vector<1x16x16xf32> to vector<4x16x16xf32>
    %37 = arith.mulf %36, %26 : vector<4x16x16xf32>
    %38 = vector.shape_cast %20 : vector<16x16xf32> to vector<1x16x16xf32>
    %39 = vector.broadcast %38 : vector<1x16x16xf32> to vector<4x16x16xf32>
    %40 = arith.mulf %39, %23 : vector<4x16x16xf32>
    %41 = arith.addf %37, %40 : vector<4x16x16xf32>
    %42 = vector.shape_cast %41 : vector<4x16x16xf32> to vector<64x16xf32>
    %43 = arith.truncf %34 : vector<64x16xf32> to vector<64x16xbf16>
    %44 = arith.truncf %42 : vector<64x16xf32> to vector<64x16xbf16>
    %45 = arith.addf %43, %44 : vector<64x16xbf16>
    %cst = arith.constant dense<0.000000e+00> : vector<64x16xf32>
    %46 = tpu.matmul %43, %8, %cst {dimension_numbers = #tpu.dot_dimension_numbers<[1], [0], [0], [1], [0, 0, 1, 1], [], []>} : vector<64x16xbf16>, vector<16x16xbf16>, vector<64x16xf32> -> vector<64x16xf32>
    %cst_29 = arith.constant dense<0.000000e+00> : vector<64x16xf32>
    %47 = tpu.matmul %44, %10, %cst_29 {dimension_numbers = #tpu.dot_dimension_numbers<[1], [0], [0], [1], [0, 0, 1, 1], [], []>} : vector<64x16xbf16>, vector<16x16xbf16>, vector<64x16xf32> -> vector<64x16xf32>
    %cst_30 = arith.constant dense<0.000000e+00> : vector<64x16xf32>
    %48 = tpu.matmul %45, %13, %cst_30 {dimension_numbers = #tpu.dot_dimension_numbers<[1], [0], [0], [1], [0, 0, 1, 1], [], []>} : vector<64x16xbf16>, vector<16x16xbf16>, vector<64x16xf32> -> vector<64x16xf32>
    %49 = arith.subf %46, %47 : vector<64x16xf32>
    %50 = arith.subf %48, %46 : vector<64x16xf32>
    %51 = arith.subf %50, %47 : vector<64x16xf32>
    %52 = vector.shape_cast %49 : vector<64x16xf32> to vector<4x16x16xf32>
    %53 = tpu.transpose %52, [0, 2, 1] : vector<4x16x16xf32> -> vector<4x16x16xf32>
    %54 = vector.shape_cast %53 : vector<4x16x16xf32> to vector<64x16xf32>
    %55 = vector.shape_cast %51 : vector<64x16xf32> to vector<4x16x16xf32>
    %56 = tpu.transpose %55, [0, 2, 1] : vector<4x16x16xf32> -> vector<4x16x16xf32>
    %57 = vector.shape_cast %56 : vector<4x16x16xf32> to vector<64x16xf32>
    %58 = arith.truncf %54 : vector<64x16xf32> to vector<64x16xbf16>
    %59 = arith.truncf %57 : vector<64x16xf32> to vector<64x16xbf16>
    %60 = arith.addf %58, %59 : vector<64x16xbf16>
    %cst_31 = arith.constant dense<0.000000e+00> : vector<64x16xf32>
    %61 = tpu.matmul %58, %4, %cst_31 {dimension_numbers = #tpu.dot_dimension_numbers<[1], [0], [0], [1], [0, 0, 1, 1], [], []>} : vector<64x16xbf16>, vector<16x16xbf16>, vector<64x16xf32> -> vector<64x16xf32>
    %cst_32 = arith.constant dense<0.000000e+00> : vector<64x16xf32>
    %62 = tpu.matmul %59, %6, %cst_32 {dimension_numbers = #tpu.dot_dimension_numbers<[1], [0], [0], [1], [0, 0, 1, 1], [], []>} : vector<64x16xbf16>, vector<16x16xbf16>, vector<64x16xf32> -> vector<64x16xf32>
    %cst_33 = arith.constant dense<0.000000e+00> : vector<64x16xf32>
    %63 = tpu.matmul %60, %11, %cst_33 {dimension_numbers = #tpu.dot_dimension_numbers<[1], [0], [0], [1], [0, 0, 1, 1], [], []>} : vector<64x16xbf16>, vector<16x16xbf16>, vector<64x16xf32> -> vector<64x16xf32>
    %64 = arith.subf %61, %62 : vector<64x16xf32>
    %65 = arith.subf %63, %61 : vector<64x16xf32>
    %66 = arith.subf %65, %62 : vector<64x16xf32>
    %67 = vector.shape_cast %64 : vector<64x16xf32> to vector<4x16x16xf32>
    %68 = vector.shape_cast %66 : vector<64x16xf32> to vector<4x16x16xf32>
    %c0_34 = arith.constant 0 : index
    %c0_35 = arith.constant 0 : index
    %69 = vector.load %arg2[%c0_34, %c0_35] : memref<16x1xf32, #tpu.memory_space<vmem>>, vector<16x1xf32>
    %70 = vector.shape_cast %69 : vector<16x1xf32> to vector<1x16x1xf32>
    %c0_36 = arith.constant 0 : index
    %c0_37 = arith.constant 0 : index
    %c0_38 = arith.constant 0 : index
    %c0_39 = arith.constant 0 : index
    %c0_40 = arith.constant 0 : index
    %71 = vector.load %arg7[%c0_36, %c0_37, %c0_38, %c0_39, %c0_40] : memref<1x2x4x16x16xbf16, #tpu.memory_space<vmem>>, vector<1x1x4x16x16xbf16>
    %72 = vector.shape_cast %71 : vector<1x1x4x16x16xbf16> to vector<4x16x16xbf16>
    %73 = arith.extf %72 : vector<4x16x16xbf16> to vector<4x16x16xf32>
    %c0_41 = arith.constant 0 : index
    %c1_42 = arith.constant 1 : index
    %c0_43 = arith.constant 0 : index
    %c0_44 = arith.constant 0 : index
    %c0_45 = arith.constant 0 : index
    %74 = vector.load %arg7[%c0_41, %c1_42, %c0_43, %c0_44, %c0_45] : memref<1x2x4x16x16xbf16, #tpu.memory_space<vmem>>, vector<1x1x4x16x16xbf16>
    %75 = vector.shape_cast %74 : vector<1x1x4x16x16xbf16> to vector<4x16x16xbf16>
    %76 = arith.extf %75 : vector<4x16x16xbf16> to vector<4x16x16xf32>
    %77 = arith.subf %67, %73 : vector<4x16x16xf32>
    %78 = vector.broadcast %70 : vector<1x16x1xf32> to vector<4x16x16xf32>
    %79 = arith.mulf %78, %77 : vector<4x16x16xf32>
    %80 = arith.subf %67, %79 : vector<4x16x16xf32>
    %81 = arith.subf %68, %76 : vector<4x16x16xf32>
    %82 = vector.broadcast %70 : vector<1x16x1xf32> to vector<4x16x16xf32>
    %83 = arith.mulf %82, %81 : vector<4x16x16xf32>
    %84 = arith.subf %68, %83 : vector<4x16x16xf32>
    %85 = vector.shape_cast %80 : vector<4x16x16xf32> to vector<64x16xf32>
    %86 = vector.shape_cast %84 : vector<4x16x16xf32> to vector<64x16xf32>
    %87 = arith.truncf %85 : vector<64x16xf32> to vector<64x16xbf16>
    %88 = arith.truncf %86 : vector<64x16xf32> to vector<64x16xbf16>
    %89 = arith.addf %87, %88 : vector<64x16xbf16>
    %cst_46 = arith.constant dense<0.000000e+00> : vector<64x16xf32>
    %90 = tpu.matmul %87, %4, %cst_46 {dimension_numbers = #tpu.dot_dimension_numbers<[1], [0], [0], [1], [0, 0, 1, 1], [], []>} : vector<64x16xbf16>, vector<16x16xbf16>, vector<64x16xf32> -> vector<64x16xf32>
    %cst_47 = arith.constant dense<0.000000e+00> : vector<64x16xf32>
    %91 = tpu.matmul %88, %6, %cst_47 {dimension_numbers = #tpu.dot_dimension_numbers<[1], [0], [0], [1], [0, 0, 1, 1], [], []>} : vector<64x16xbf16>, vector<16x16xbf16>, vector<64x16xf32> -> vector<64x16xf32>
    %cst_48 = arith.constant dense<0.000000e+00> : vector<64x16xf32>
    %92 = tpu.matmul %89, %12, %cst_48 {dimension_numbers = #tpu.dot_dimension_numbers<[1], [0], [0], [1], [0, 0, 1, 1], [], []>} : vector<64x16xbf16>, vector<16x16xbf16>, vector<64x16xf32> -> vector<64x16xf32>
    %93 = arith.addf %90, %91 : vector<64x16xf32>
    %94 = arith.subf %92, %90 : vector<64x16xf32>
    %95 = arith.addf %94, %91 : vector<64x16xf32>
    %96 = vector.shape_cast %93 : vector<64x16xf32> to vector<4x16x16xf32>
    %97 = tpu.transpose %96, [0, 2, 1] : vector<4x16x16xf32> -> vector<4x16x16xf32>
    %98 = vector.shape_cast %97 : vector<4x16x16xf32> to vector<64x16xf32>
    %99 = vector.shape_cast %95 : vector<64x16xf32> to vector<4x16x16xf32>
    %100 = tpu.transpose %99, [0, 2, 1] : vector<4x16x16xf32> -> vector<4x16x16xf32>
    %101 = vector.shape_cast %100 : vector<4x16x16xf32> to vector<64x16xf32>
    %102 = arith.truncf %98 : vector<64x16xf32> to vector<64x16xbf16>
    %103 = arith.truncf %101 : vector<64x16xf32> to vector<64x16xbf16>
    %104 = arith.addf %102, %103 : vector<64x16xbf16>
    %cst_49 = arith.constant dense<0.000000e+00> : vector<64x16xf32>
    %105 = tpu.matmul %102, %8, %cst_49 {dimension_numbers = #tpu.dot_dimension_numbers<[1], [0], [0], [1], [0, 0, 1, 1], [], []>} : vector<64x16xbf16>, vector<16x16xbf16>, vector<64x16xf32> -> vector<64x16xf32>
    %cst_50 = arith.constant dense<0.000000e+00> : vector<64x16xf32>
    %106 = tpu.matmul %103, %10, %cst_50 {dimension_numbers = #tpu.dot_dimension_numbers<[1], [0], [0], [1], [0, 0, 1, 1], [], []>} : vector<64x16xbf16>, vector<16x16xbf16>, vector<64x16xf32> -> vector<64x16xf32>
    %cst_51 = arith.constant dense<0.000000e+00> : vector<64x16xf32>
    %107 = tpu.matmul %104, %14, %cst_51 {dimension_numbers = #tpu.dot_dimension_numbers<[1], [0], [0], [1], [0, 0, 1, 1], [], []>} : vector<64x16xbf16>, vector<16x16xbf16>, vector<64x16xf32> -> vector<64x16xf32>
    %108 = arith.addf %105, %106 : vector<64x16xf32>
    %109 = arith.subf %107, %105 : vector<64x16xf32>
    %110 = arith.addf %109, %106 : vector<64x16xf32>
    %111 = vector.shape_cast %108 : vector<64x16xf32> to vector<4x16x16xf32>
    %112 = vector.shape_cast %110 : vector<64x16xf32> to vector<4x16x16xf32>
    %c0_52 = arith.constant 0 : index
    %c0_53 = arith.constant 0 : index
    %c0_54 = arith.constant 0 : index
    %c0_55 = arith.constant 0 : index
    %113 = vector.load %arg8[%c0_52, %c0_53, %c0_54, %c0_55] : memref<1x2x16x16xf32, #tpu.memory_space<vmem>>, vector<1x1x16x16xf32>
    %114 = vector.shape_cast %113 : vector<1x1x16x16xf32> to vector<16x16xf32>
    %115 = arith.mulf %111, %23 : vector<4x16x16xf32>
    %116 = arith.mulf %112, %26 : vector<4x16x16xf32>
    %117 = arith.addf %115, %116 : vector<4x16x16xf32>
    %cst_56 = arith.constant dense<0.000000e+00> : vector<16x16xf32>
    %118 = vector.multi_reduction <add>, %117, %cst_56 [0] : vector<4x16x16xf32> to vector<16x16xf32>
    %119 = arith.addf %114, %118 : vector<16x16xf32>
    %c0_57 = arith.constant 0 : index
    %c0_58 = arith.constant 0 : index
    %c0_59 = arith.constant 0 : index
    %c0_60 = arith.constant 0 : index
    %120 = vector.load %arg8[%c0_57, %c0_58, %c0_59, %c0_60] : memref<1x2x16x16xf32, #tpu.memory_space<vmem>>, vector<1x1x16x16xf32>
    %121 = vector.shape_cast %120 : vector<1x1x16x16xf32> to vector<16x16xf32>
    %122 = vector.shape_cast %119 : vector<16x16xf32> to vector<1x1x16x16xf32>
    tpu.vector_store %arg8[%c0_57, %c0_58, %c0_59, %c0_60], %122 {strides = array<i32>} : memref<1x2x16x16xf32, #tpu.memory_space<vmem>>, vector<1x1x16x16xf32>,
    %c0_61 = arith.constant 0 : index
    %c1_62 = arith.constant 1 : index
    %c0_63 = arith.constant 0 : index
    %c0_64 = arith.constant 0 : index
    %123 = vector.load %arg8[%c0_61, %c1_62, %c0_63, %c0_64] : memref<1x2x16x16xf32, #tpu.memory_space<vmem>>, vector<1x1x16x16xf32>
    %124 = vector.shape_cast %123 : vector<1x1x16x16xf32> to vector<16x16xf32>
    %125 = arith.mulf %112, %23 : vector<4x16x16xf32>
    %126 = arith.mulf %111, %26 : vector<4x16x16xf32>
    %127 = arith.subf %125, %126 : vector<4x16x16xf32>
    %cst_65 = arith.constant dense<0.000000e+00> : vector<16x16xf32>
    %128 = vector.multi_reduction <add>, %127, %cst_65 [0] : vector<4x16x16xf32> to vector<16x16xf32>
    %129 = arith.addf %124, %128 : vector<16x16xf32>
    %c0_66 = arith.constant 0 : index
    %c1_67 = arith.constant 1 : index
    %c0_68 = arith.constant 0 : index
    %c0_69 = arith.constant 0 : index
    %130 = vector.load %arg8[%c0_66, %c1_67, %c0_68, %c0_69] : memref<1x2x16x16xf32, #tpu.memory_space<vmem>>, vector<1x1x16x16xf32>
    %131 = vector.shape_cast %130 : vector<1x1x16x16xf32> to vector<16x16xf32>
    %132 = vector.shape_cast %129 : vector<16x16xf32> to vector<1x1x16x16xf32>
    tpu.vector_store %arg8[%c0_66, %c1_67, %c0_68, %c0_69], %132 {strides = array<i32>} : memref<1x2x16x16xf32, #tpu.memory_space<vmem>>, vector<1x1x16x16xf32>,
    return
  }
  func.func @transform_0(%arg0: i32, %arg1: i32) -> (i32, i32) {
    %c0_i32 = arith.constant 0 : i32
    %c0_i32_0 = arith.constant 0 : i32
    %c0_i32_1 = arith.constant 0 : i32
    return %c0_i32, %c0_i32_0 : i32, i32
  }
  func.func @transform_1(%arg0: i32, %arg1: i32) -> (i32, i32, i32) {
    %c0_i32 = arith.constant 0 : i32
    %c0_i32_0 = arith.constant 0 : i32
    %c0_i32_1 = arith.constant 0 : i32
    %c0_i32_2 = arith.constant 0 : i32
    return %c0_i32, %c0_i32_0, %c0_i32_1 : i32, i32, i32
  }
  func.func @transform_2(%arg0: i32, %arg1: i32) -> (i32, i32, i32) {
    %c0_i32 = arith.constant 0 : i32
    %c0_i32_0 = arith.constant 0 : i32
    %c0_i32_1 = arith.constant 0 : i32
    %c0_i32_2 = arith.constant 0 : i32
    return %c0_i32, %c0_i32_0, %c0_i32_1 : i32, i32, i32
  }
  func.func @transform_3(%arg0: i32, %arg1: i32) -> (i32, i32, i32, i32) {
    %c0_i32 = arith.constant 0 : i32
    %c0_i32_0 = arith.constant 0 : i32
    %c0_i32_1 = arith.constant 0 : i32
    %c0_i32_2 = arith.constant 0 : i32
    return %arg0, %c0_i32, %c0_i32_0, %c0_i32_1 : i32, i32, i32, i32
  }
  func.func @transform_4(%arg0: i32, %arg1: i32) -> (i32, i32, i32, i32, i32) {
    %c0_i32 = arith.constant 0 : i32
    %c0_i32_0 = arith.constant 0 : i32
    %c0_i32_1 = arith.constant 0 : i32
    %c0_i32_2 = arith.constant 0 : i32
    return %arg0, %c0_i32, %arg1, %c0_i32_0, %c0_i32_1 : i32, i32, i32, i32, i32
  }
  func.func @transform_5(%arg0: i32, %arg1: i32) -> (i32, i32, i32, i32, i32) {
    %c0_i32 = arith.constant 0 : i32
    %c0_i32_0 = arith.constant 0 : i32
    %c0_i32_1 = arith.constant 0 : i32
    %c0_i32_2 = arith.constant 0 : i32
    return %arg0, %c0_i32, %arg1, %c0_i32_0, %c0_i32_1 : i32, i32, i32, i32, i32
  }
  func.func @transform_6(%arg0: i32, %arg1: i32) -> (i32, i32, i32, i32) {
    %c0_i32 = arith.constant 0 : i32
    %c0_i32_0 = arith.constant 0 : i32
    %c0_i32_1 = arith.constant 0 : i32
    %c0_i32_2 = arith.constant 0 : i32
    return %arg0, %c0_i32, %c0_i32_0, %c0_i32_1 : i32, i32, i32, i32
  }
}

</mosaic_0001>

<bundles_post_ra>
// kernel: tpu_custom_call.1
= control target key start
LH: loop header
LB: loop body
LE: loop exit
PB: predicated region body
PF: predicated region fallthrough
CT: control target
= control target key end

     0   :  { %s3693_s0 = inlined_call_operand.vmem [shape: f32[16,1], index: 0, kind: input, shape index: {}]   ;;  %s3694_s1 = inlined_call_operand.vmem [shape: bf16[2,16,16], index: 1, kind: input, shape index: {}]   ;;  %s3695_s2 = inlined_call_operand.hbm [shape: bf16[2,16,16], index: 2, kind: input, shape index: {}]   ;;  %s3696_s3 = inlined_call_operand.hbm [shape: bf16[2,2,16,16], index: 3, kind: input, shape index: {}]   ;;  %s3697_s4 = inlined_call_operand.hbm [shape: bf16[2,2,8,16,16], index: 4, kind: input, shape index: {}]   ;;  %s3698_s5 = inlined_call_operand.hbm [shape: bf16[2,2,8,16,16], index: 5, kind: input, shape index: {}]   ;;  %s3699_s6 = inlined_call_operand.hbm [shape: f32[2,2,16,16], index: 6, kind: output, shape index: {}]  }
   0x1   :  { %3712 = sst [smem:[#allocation30_spill]] %s3693_s0 }
   0x2   :  { %3713 = sst [smem:[#allocation31_spill]] %s3694_s1 }
   0x3   :  { %3714 = sst [smem:[#allocation32_spill]] %s3695_s2 }
   0x4   :  { %3715 = sst [smem:[#allocation33_spill]] %s3699_s6 }
   0x5   :  { %11 = vsyncpa [#allocation3], 0 }
   0x6   :  { %12 = vsyncpa [#allocation6], 0 }
   0x7   :  { %14 = vsyncpa [#allocation6 + $0x1], 0 }
   0x8   :  { %15 = vsyncpa [#allocation9], 0 }
   0x9   :  { %17 = vsyncpa [#allocation9 + $0x1], 0 }
   0xa   :  { %18 = vsyncpa [#allocation4], 0 }
   0xb   :  { %20 = vsyncpa [#allocation4 + $0x1], 0  ;;  %s3107_s21 = smov 0   ;;  %s3109_s22 = smov 0  }
   0xc   :  { %s3111_s23 = smov 0   ;;  %s3113_s24 = smov 0  }
   0xd   :  { %s3115_s25 = smov 0   ;;  %s3117_s26 = smov 0  }
   0xe   :  { %s3119_s27 = smov 0   ;;  %s3121_s28 = smov 0  }
   0xf   :  { %s3123_s29 = smov 0   ;;  %s3125_s30 = smov 0  }
  0x10   :  { %s3127_s7 = smov 0  }
  0x11 LB: > { %3716 = sst [smem:[#allocation22_spill]] %s3021_s24  ;;  %s3163_s8 = sadd.s32 4294967295, %s3049_s7   ;;  %s3049_s7 = sphi %s3127_s7, %s26_s7   ;;  %s3045_s30 = sphi %s3125_s30, %s3755_s30   ;;  %s3041_s29 = sphi %s3123_s29, %s3754_s29   ;;  %s3037_s28 = sphi %s3121_s28, %s3753_s28   ;;  %s3033_s27 = sphi %s3119_s27, %s3752_s27   ;;  %s3029_s26 = sphi %s3117_s26, %s3751_s26   ;;  %s3025_s25 = sphi %s3115_s25, %s3750_s25   ;;  %s3021_s24 = sphi %s3113_s24, %s3749_s24   ;;  %s3017_s23 = sphi %s3111_s23, %s3748_s23   ;;  %s3013_s22 = sphi %s3109_s22, %s3747_s22   ;;  %s3009_s21 = sphi %s3107_s21, %s3746_s21  }
  0x12   : > { %3717 = sst [smem:[#allocation23_spill]] %s3037_s28  ;;  %s2379_s9 = sadd.s32 4294967294, %s3049_s7  }
  0x13   : > { %s35_s10 = sadd.s32 1, %s3041_s29  ;;  %s38_s11 = sadd.s32 1, %s3045_s30 }
  0x14   : > { %p36_p0 = scmp.ge.s32.totalorder %s35_s10, 2  ;;  %s108_s12 = sadd.s32 1, %s3029_s26 }
  0x15   : > { %p115_p1 = scmp.ne.s32.totalorder %s3029_s26, %s3025_s25  ;;  %p116_p2 = scmp.eq.s32.totalorder %s3049_s7, 0 }
  0x16   : > { %s3757_s10 = smov (%p36_p0, %s35_s10), 0  ;;  %s3759_s11 = smov (!%p36_p0, %s38_s11), %s3045_s30 }
  0x17   : > { %3718 = sst [smem:[#allocation24_spill]] %s3757_s10  ;;  %p3180_p3 = por %p116_p2, %p115_p1 }
  0x18   : > { %p3702_p4 = scmp.ne.s32.totalorder %s3025_s25, %s3021_s24  ;;  %p40_p5 = scmp.ge.s32.totalorder %s3759_s11, 2 }
  0x19   : > { %p122_p6 = scmp.eq.s32.totalorder %s3163_s8, 0  ;;  %s132_s14 = ssub.s32 %s3041_s29, %s3757_s10 }
  0x1a   : > { %s136_s15 = sadd.s32 1, %s3017_s23  ;;  %s3761_s11 = smov (%p40_p5, %s3759_s11), 0 }
  0x1b   : > { %3720 = sst [smem:[#allocation25_spill]] %s3761_s11  ;;  %p3197_p7 = por %p122_p6, %p3702_p4 }
  0x1c   : > { %p143_p8 = scmp.ne.s32.totalorder %s3017_s23, %s3013_s22  ;;  %s105_s17 = ssub.s32 %s3045_s30, %s3761_s11 }
  0x1d   : > { %s3721_s16 = scalar_select %p3197_p7, 1, 0 }
  0x1e   : > { %p149_p9 = scmp.ne.s32.totalorder %s3013_s22, %s3009_s21  ;;  %p106_p10 = scmp.eq.s32.totalorder %s105_s17, 0 }
  0x1f   : > { %s133_s18 = sor.u32 %s132_s14, %s105_s17  ;;  %p3209_p12 = por %p143_p8, %p116_p2 }
  0x20   : > { %p134_p11 = scmp.eq.s32.totalorder %s133_s18, 0  ;;  %p3221_p13 = por %p149_p9, %p122_p6 }
  0x21   : > { %s3214_s20 = scalar_select %p106_p10, %s3029_s26, %s108_s12  }
  0x22   : > { %s3217_s10 = scalar_select %p134_p11, %s3017_s23, %s136_s15  }
  0x23   : > { %3723 = sst [smem:[#allocation26_spill]] %s3214_s20  ;;  %p201_p0 = scmp.eq.s32.totalorder %s3163_s8, 3 }
  0x24   : > { %3724 = sst [smem:[#allocation27_spill]] %s3217_s10  ;;  %p207_p5 = scmp.eq.s32.totalorder %s2379_s9, 3 }
  0x25   : > { %p2380_p4 = scmp.ge.s32.totalorder %s3049_s7, 1  ;;  %p3230_p7 = por %p201_p0, %p115_p1 }
  0x26   : > { %p214_p2 = scmp.lt.s32.totalorder %s3049_s7, 5  ;;  %p3728_p8 = scmp.ne.s32.totalorder %s3025_s25, %s3021_s24 }
  0x27   : > { %s3726_s21 = scalar_select %p3230_p7, 1, 0 }
  0x28   : > { %p3238_p10 = por %p207_p5, %p3728_p8  ;;  %p3242_p11 = pnand %p2380_p4, %p214_p2 }
  0x29   : > { %3727 = sst [smem:[#allocation28_spill]] %s3726_s21  ;;  %s3051_s18 = smov [#allocation2]  }
  0x2a   : > { %s3729_s12 = scalar_select %p3238_p10, 1, 0 }
  0x2b   : > { %s3732_s2 = sld [smem:[#allocation32_spill]]  ;;  %p2621_p1 = pneg %p3242_p11 }
  0x2c   : > { %3730 = sst [smem:[#allocation29_spill]] %s3729_s12  ;;  %s233_s11 = sshll.u32 %s3051_s18, 4  ;;  %s234_s11 = int_to_ptr.vmem [resolvable:$true] %s233_s11 }
  0x2d   : > { %p2622_p9 = pnand %p2621_p1, %p122_p6  ;;  %s3052_s20 = smov 64  }
  0x2e   : > { %s3053_s10 = smov 4   ;;  %p2382_p4 = scmp.ge.s32.totalorder %s3049_s7, 4 }
  0x2f   : > { %s247_s15 = sand.u32 (!%p2382_p4), 1, %s3049_s7   ;;  %s249_s17 = sand.u32 (!%p2382_p4), 1, %s3029_s26  }
  0x30   : > { %243 = sbr.rel (%p2382_p4) target bundleno = 85 (0x55), region = 28  ;;  %s2500_s12 = sshll.u32 (!%p2382_p4), %s3045_s30, 4 }
  0x31   : > { %s231_s9 = sshll.u32 %s3732_s2, 4  ;;  %s2383_s2 = sshll.u32 (!%p2382_p4), %s249_s17, 4  ;;  %s232_s9 = int_to_ptr.hbm [resolvable:$true] %s231_s9 }
  0x32   : > { %2624 = dma.hbm_to_vmem [thread:$0]  (!%p2622_p9), %s232_s9, 256, %s234_s11, [#allocation3], %s3052_s20, %s3052_s20, %s3053_s10  }
  0x33   : > { %s256_s18 = scalar_lea.hbm (!%p2382_p4), %s3696_s3, %s2500_s12  ;;  %s251_s28 = scalar_lea.vmem (!%p2382_p4), [#allocation5], %s2383_s2 }
  0x34   : > { %s259_s0 = sshll.u32 (!%p2382_p4), %s251_s28, 4  ;;  %s257_s1 = sshll.u32 (!%p2382_p4), %s256_s18, 4  ;;  %s260_s0 = int_to_ptr.vmem [resolvable:$true] %s259_s0  ;;  %s258_s1 = int_to_ptr.hbm [resolvable:$true] %s257_s1 }
  0x35   : > { %s3260_s10 = scalar_lea.sflag [#allocation6], %s247_s15  ;;  %s3054_s11 = smov 64  }
  0x36   : > { %s3055_s20 = smov 4  }
  0x37   : > { %2597 = dma.hbm_to_vmem [thread:$0]  (%p3180_p3), %s258_s1, 256, %s260_s0, %s3260_s10, %s3054_s11, %s3054_s11, %s3055_s20  }
  0x38   : > { %s3711_s24 = sand.u32 1, %s3017_s23   ;;  %s2501_s21 = sshll.u32 %s3041_s29, 3 }
  0x39   : > { %s3269_s2 = sshll.u32 %s3711_s24, 6  ;;  %s2389_s28 = sshll.u32 %s3045_s30, 5 }
  0x3a   : > { %s279_s12 = sadd.s32 %s2501_s21, %s2389_s28  ;;  %s273_s13 = scalar_lea.vmem [#allocation7], %s3269_s2 }
  0x3b   : > { %s2390_s9 = sshll.u32 %s279_s12, 2  ;;  %s296_s0 = sshll.u32 %s273_s13, 4  ;;  %s297_s0 = int_to_ptr.vmem [resolvable:$true] %s296_s0 }
  0x3c   : > { %s281_s17 = scalar_lea.hbm %s3697_s4, %s2390_s9  ;;  %s3056_s24 = smov 1024  }
  0x3d   : > { %s2598_s18 = scalar_select %p3209_p12, [#allocation0], [#allocation15] }
  0x3e   : > { %s294_s11 = sshll.u32 %s281_s17, 4  ;;  %2599 = sst [smem:[#allocation12]] (%p3209_p12), %s3056_s24  ;;  %s295_s11 = int_to_ptr.hbm [resolvable:$true] %s294_s11 }
  0x3f   : > { %s286_s20 = sld [smem:[%s2598_s18]]   ;;  %s3057_s21 = smov 512  }
  0x40   : > { %2600 = sst [smem:[#allocation12 + $0x1]] (%p3209_p12), %s3057_s21  ;;  %s3058_s28 = smov 8  }
  0x41   : > { %2601 = sst [smem:[#allocation12 + $0x2]] (%p3209_p12), %s3058_s28  ;;  %s3059_s12 = smov 64  }
  0x42   : > { %2602 = sst [smem:[#allocation12 + $0x3]] (%p3209_p12), %s3059_s12  ;;  %s3060_s1 = smov 4  }
  0x43   : > { %2603 = sst [smem:[#allocation12 + $0x4]] (%p3209_p12), %s3059_s12  ;;  %s3061_s17 = smov [#allocation11]  }
  0x44   : > { %2604 = sst [smem:[#allocation12 + $0x5]] (%p3209_p12), %s3060_s1 }
  0x45   : > { %s2391_s13 = sshll.u32 %s286_s20, 26 }
  0x46   : > { %s2392_s15 = sadd.s32 134217728, %s2391_s13 }
  0x47   : > { %2605 = dma.general (%p3209_p12), %s295_s11, 1024, %s297_s0, %s3260_s10, %s3061_s17, [#allocation12], %s2392_s15, 0  }
  0x48   : > { %s331_s21 = scalar_lea.hbm %s3698_s5, %s2390_s9  ;;  %s323_s28 = scalar_lea.vmem [#allocation8], %s3269_s2 }
  0x49   : > { %s346_s20 = sshll.u32 %s323_s28, 4  ;;  %s344_s1 = sshll.u32 %s331_s21, 4  ;;  %s347_s20 = int_to_ptr.vmem [resolvable:$true] %s346_s20  ;;  %s345_s1 = int_to_ptr.hbm [resolvable:$true] %s344_s1 }
  0x4a   : > { %s2606_s12 = scalar_select %p3209_p12, [#allocation0], [#allocation16] }
  0x4b   : > { %s3062_s0 = smov 1024   ;;  %s3063_s11 = smov 512  }
  0x4c   : > { %s336_s10 = sld [smem:[%s2606_s12]]   ;;  %s3064_s13 = smov 8  }
  0x4d   : > { %2607 = sst [smem:[#allocation14]] (%p3209_p12), %s3062_s0  ;;  %s3065_s2 = smov 64  }
  0x4e   : > { %2608 = sst [smem:[#allocation14 + $0x1]] (%p3209_p12), %s3063_s11  ;;  %s3066_s17 = smov 4  }
  0x4f   : > { %2609 = sst [smem:[#allocation14 + $0x2]] (%p3209_p12), %s3064_s13  ;;  %s3733_s24 = sand.u32 1, %s3017_s23  }
  0x50   : > { %2610 = sst [smem:[#allocation14 + $0x3]] (%p3209_p12), %s3065_s2  ;;  %s320_s18 = scalar_lea.sflag [#allocation9], %s3733_s24 }
  0x51   : > { %2611 = sst [smem:[#allocation14 + $0x4]] (%p3209_p12), %s3065_s2  ;;  %s3067_s21 = smov [#allocation13]  }
  0x52   : > { %s2398_s9 = sshll.u32 %s336_s10, 26  ;;  %2612 = sst [smem:[#allocation14 + $0x5]] (%p3209_p12), %s3066_s17 }
  0x53   : > { %s2399_s15 = sadd.s32 134217728, %s2398_s9 }
  0x54   : > { %2613 = dma.general (%p3209_p12), %s345_s1, 1024, %s347_s20, %s320_s18, %s3067_s21, [#allocation14], %s2399_s15, 0  }
  0x55 PF: > { %371 = sbr.rel (%p3242_p11) target bundleno = 1134 (0x46e), region = 44 }
  0x5a   : > { %2988 = dma.done.wait (%p122_p6), [#allocation3], 256  }
  0x5b   : > { %2990 = vsyncadd (%p122_p6), [#allocation3], 4294967040  ;;  %s378_s28 = sand.u32 1, %s3163_s8   ;;  %s3323_s12 = sand.u32 1, %s3025_s25  }
  0x5c   : > { %s2402_s10 = sshll.u32 %s3323_s12, 4  ;;  %s379_s19 = scalar_lea.sflag [#allocation6], %s378_s28 }
  0x5d   : > { %s382_s20 = scalar_lea.vmem [#allocation5], %s2402_s10  ;;  %p3734_p3 = scmp.ne.s32.totalorder %s3721_s16, 0 }
  0x5f   : > { %2992 = dma.done.wait (%p3734_p3), %s379_s19, 256  }
  0x60   : > { %2994 = vsyncadd (%p3734_p3), %s379_s19, 4294967040  ;;  %s390_s14 = sand.u32 1, %s3013_s22  }
  0x61   : > { %s2403_s1 = sshll.u32 %s390_s14, 6 }
  0x62   : > { %s3331_s0 = scalar_lea.vmem [#allocation7], %s2403_s1 }
  0x63   : > { %2996 = dma.done.wait (%p3221_p13), %s379_s19, 1024  }
  0x64   : > { %2998 = vsyncadd (%p3221_p13), %s379_s19, 4294966272  ;;  %s399_s8 = scalar_lea.sflag [#allocation9], %s390_s14  ;;  %s3337_s11 = scalar_lea.vmem [#allocation8], %s2403_s1 }
  0x65   : > { %3000 = dma.done.wait (%p3221_p13), %s399_s8, 1024  }
  0x66   : > { %3002 = vsyncadd (%p3221_p13), %s399_s8, 4294966272  ;;  %s2405_s16 = sshll.u32 %s3323_s12, 5  ;;  %p2406_p6 = scmp.ne.s32.totalorder %s3033_s27, 0 }
  0x67   : > { %s3344_s13 = scalar_lea.vmem [#allocation10], %s2405_s16 }
  0x68   : > { %448 = sbr.rel (%p2406_p6) target bundleno = 114 (0x72), region = 64 }
  0x6d   : > { %vm449_vm0 = vcmask 130048   ;;  %v3068_v0 = vmov 0.0  }
  0x6e   : > { %450 = vst.msk [vmem:[%s3344_s13] sm:$0xff] %vm449_vm0, %v3068_v0 }
  0x6f   : > { %451 = vst.msk [vmem:[%s3344_s13 + $0x8] sm:$0xff] %vm449_vm0, %v3068_v0 }
  0x70   : > { %452 = vst.msk [vmem:[%s3344_s13 + $0x10] sm:$0xff] %vm449_vm0, %v3068_v0 }
  0x71   : > { %453 = vst.msk [vmem:[%s3344_s13 + $0x18] sm:$0xff] %vm449_vm0, %v3068_v0 }
  0x72 PF: > { %v3351_v1 = vld [vmem:[#allocation2] sm:$0xff]  ;;  %v3353_v2 = vld [vmem:[#allocation2 + $0x8] sm:$0xff]  ;;  %v2517_v13 = vld [vmem:[%s3331_s0] sm:$0xff]   ;;  %vm644_vm1 = vcmask 130048   ;;  %s3735_s2 = sld [smem:[#allocation31_spill]]  ;;  %s2230_s9 = sshll.u32 %s3344_s13, 4  ;;  %s2231_s9 = int_to_ptr.vmem [resolvable:$true] %s2230_s9 }
  0x73   : > { %v459_v3 = vld [vmem:[#allocation2] sm:$0xff]   ;;  %v462_v4 = vld [vmem:[#allocation2 + $0x8] sm:$0xff]   ;;  %664 = vmatpush.bf16.msra.mxu0 %v3351_v1  ;;  %731 = vmatpush.bf16.msra.mxu1 %v3353_v2  ;;  %v2584_v14 = vld [vmem:[%s3331_s0 + $0x20] sm:$0xff]   ;;  %v3367_v17 = vunpack.c.l.bf16 %v2517_v13  ;;  %v3369_v18 = vunpack.c.h.bf16 %v2517_v13  ;;  %s3736_s19 = sld [smem:[#allocation30_spill]]  ;;  %s2218_s17 = scalar_lea.sflag [#allocation4], %s3323_s12 }
  0x74   : > { %v474_v5 = vunpack.c.l.bf16 %v459_v3  ;;  %v475_v6 = vunpack.c.h.bf16 %v459_v3  ;;  %v2509_v7 = vld [vmem:[%s382_s20] sm:$0xff]   ;;  %v2580_v8 = vld [vmem:[%s382_s20 + $0x8] sm:$0xff]   ;;  %v476_v9 = vunpack.c.l.bf16 %v462_v4  ;;  %v477_v10 = vunpack.c.h.bf16 %v462_v4  ;;  %s3737_s1 = sld [smem:[#allocation23_spill]] }
  0x75   : > { %v3357_v11 = vunpack.c.l.bf16 %v2509_v7  ;;  %v3359_v12 = vunpack.c.h.bf16 %v2509_v7  ;;  %v3363_v15 = vunpack.c.l.bf16 %v2580_v8  ;;  %v3365_v16 = vunpack.c.h.bf16 %v2580_v8  ;;  %v2581_v19 = vld [vmem:[%s3331_s0 + $0x8] sm:$0xff]   ;;  %v2582_v13 = vld [vmem:[%s3331_s0 + $0x10] sm:$0xff]   ;;  %s3738_s16 = sld [smem:[#allocation33_spill]] }
  0x76   : > { %v478_v20 = vadd.f32 %v476_v9, %v474_v5  ;;  %v479_v21 = vadd.f32 %v477_v10, %v475_v6  ;;  %v3372_v22 = vsub.f32 %v474_v5, %v476_v9  ;;  %v3374_v23 = vsub.f32 %v475_v6, %v477_v10  ;;  %v2585_v28 = vld [vmem:[%s3331_s0 + $0x28] sm:$0xff]  }
  0x77   : > { %v3376_v24 = vunpack.c.l.bf16 %v2584_v14  ;;  %v3378_v25 = vunpack.c.h.bf16 %v2584_v14  ;;  %v526_v26 = vmul.f32 %v3367_v17, %v3357_v11  ;;  %v527_v27 = vmul.f32 %v3369_v18, %v3359_v12 }
  0x78   : > { %v480_v29 = vpack.c.bf16 %v479_v21, %v478_v20  ;;  %v558_v30 = vmul.f32 %v3367_v17, %v3363_v15  ;;  %v559_v31 = vmul.f32 %v3369_v18, %v3365_v16  ;;  %v3389_v32 = vunpack.c.l.bf16 %v2581_v19 }
  0x79   : > { %v534_v33 = vmul.f32 %v3376_v24, %v3363_v15  ;;  %v535_v34 = vmul.f32 %v3378_v25, %v3365_v16  ;;  %v550_v35 = vmul.f32 %v3376_v24, %v3357_v11  ;;  %v551_v36 = vmul.f32 %v3378_v25, %v3359_v12 }
  0x7a   : > { %772 = vmatpush.bf16.msra.mxu2 %v480_v29  ;;  %v3399_v37 = vunpack.c.h.bf16 %v2581_v19  ;;  %v3401_v38 = vunpack.c.l.bf16 %v2585_v28  ;;  %v3403_v39 = vunpack.c.h.bf16 %v2585_v28  ;;  %v528_v44 = vmul.f32 %v3389_v32, %v3357_v11 }
  0x7b   : > { %v542_v40 = vsub.f32 %v526_v26, %v534_v33  ;;  %v543_v41 = vsub.f32 %v527_v27, %v535_v34  ;;  %v566_v42 = vadd.f32 %v558_v30, %v550_v35  ;;  %v567_v43 = vadd.f32 %v559_v31, %v551_v36  ;;  %v2586_v26 = vld [vmem:[%s3331_s0 + $0x30] sm:$0xff]   ;;  %s2935_s10 = scalar_lea.hbm %s3738_s16, 64 }
  0x7c   : > { %v529_v45 = vmul.f32 %v3399_v37, %v3359_v12  ;;  %v536_v46 = vmul.f32 %v3401_v38, %v3363_v15  ;;  %v537_v47 = vmul.f32 %v3403_v39, %v3365_v16  ;;  %v552_v52 = vmul.f32 %v3401_v38, %v3357_v11 }
  0x7d   : > { %v574_v48 = vpack.c.bf16 %v542_v40, %v542_v40  ;;  %v575_v49 = vpack.c.bf16 %v543_v41, %v543_v41  ;;  %v582_v50 = vpack.c.bf16 %v566_v42, %v566_v42  ;;  %v583_v51 = vpack.c.bf16 %v567_v43, %v567_v43 }
  0x7e   : > { %v553_v53 = vmul.f32 %v3403_v39, %v3359_v12  ;;  %v560_v54 = vmul.f32 %v3389_v32, %v3363_v15  ;;  %v544_v3 = vsub.f32 %v528_v44, %v536_v46  ;;  %v545_v4 = vsub.f32 %v529_v45, %v537_v47 }
  0x7f   : > { %v626_v55 = vunpack.c.l.b16 %v574_v48  ;;  %v627_v56 = vunpack.c.l.b16 %v575_v49  ;;  %v694_v57 = vunpack.c.l.b16 %v582_v50  ;;  %v695_v58 = vunpack.c.l.b16 %v583_v51 }
  0x80   : > { %v590_v59 = vunpack.c.l.bf16 %v574_v48  ;;  %v591_v60 = vunpack.c.l.bf16 %v575_v49  ;;  %v598_v61 = vunpack.c.l.bf16 %v582_v50  ;;  %v599_v62 = vunpack.c.l.bf16 %v583_v51 }
  0x81   : > { %v634_v63 = vpack.c.b16 %v627_v56, %v626_v55  ;;  %v702_v0 = vpack.c.b16 %v695_v58, %v694_v57  ;;  %v561_v7 = vmul.f32 %v3399_v37, %v3365_v16  ;;  %v568_v8 = vadd.f32 %v560_v54, %v552_v52 }
  0x82   : > { %v606_v5 = vadd.f32 %v598_v61, %v590_v59  ;;  %v607_v6 = vadd.f32 %v599_v62, %v591_v60  ;;  %v576_v14 = vpack.c.bf16 %v544_v3, %v544_v3  ;;  %v577_v19 = vpack.c.bf16 %v545_v4, %v545_v4  ;;  %v2583_v62 = vld [vmem:[%s3331_s0 + $0x18] sm:$0xff]  }
  0x83   : > { %2423 = vmatmul.msk.bf16.vlgmr.msra.gmra.mxu0 %vm644_vm1, %v634_v63  ;;  %2431 = vmatmul.msk.bf16.vlgmr.msra.gmra.mxu1 %vm644_vm1, %v702_v0  ;;  %v569_v10 = vadd.f32 %v561_v7, %v553_v53  ;;  %v584_v20 = vpack.c.bf16 %v568_v8, %v568_v8  ;;  %v3426_v27 = vunpack.c.l.bf16 %v2582_v13  ;;  %v3428_v28 = vunpack.c.h.bf16 %v2582_v13  ;;  %v2587_v3 = vld [vmem:[%s3331_s0 + $0x38] sm:$0xff]   ;;  %s2507_s0 = sshll.u32 %s3737_s1, 5 }
  0x84   : > { %v614_v9 = vpack.c.bf16 %v607_v6, %v606_v5  ;;  %v3430_v29 = vunpack.c.l.bf16 %v2586_v26  ;;  %v3432_v30 = vunpack.c.h.bf16 %v2586_v26  ;;  %v592_v31 = vunpack.c.l.bf16 %v576_v14  ;;  %s2229_s6 = scalar_lea.hbm %s3738_s16, %s2507_s0 }
  0x85   : > { %v585_v21 = vpack.c.bf16 %v569_v10, %v569_v10  ;;  %v593_v33 = vunpack.c.l.bf16 %v577_v19  ;;  %v600_v34 = vunpack.c.l.bf16 %v584_v20  ;;  %v628_v36 = vunpack.c.l.b16 %v576_v14  ;;  %s2232_s15 = sshll.u32 %s2229_s6, 4  ;;  %s2233_s15 = int_to_ptr.hbm [resolvable:$true] %s2232_s15 }
  0x86   : > { %2435 = vmatmul.msk.bf16.vlgmr.msra.gmra.mxu2 %vm644_vm1, %v614_v9  ;;  %v629_v40 = vunpack.c.l.b16 %v577_v19  ;;  %v696_v41 = vunpack.c.l.b16 %v584_v20  ;;  %v530_v43 = vmul.f32 %v3426_v27, %v3357_v11  ;;  %v531_v44 = vmul.f32 %v3428_v28, %v3359_v12  ;;  %s2929_s24 = sshra.s32 %s2233_s15, 4  ;;  %s2930_s24 = int_to_ptr.hbm [resolvable:$true] %s2929_s24 }
  0x87   : > { %v601_v35 = vunpack.c.l.bf16 %v585_v21  ;;  %v697_v42 = vunpack.c.l.b16 %v585_v21  ;;  %v538_v45 = vmul.f32 %v3430_v29, %v3363_v15  ;;  %v539_v46 = vmul.f32 %v3432_v30, %v3365_v16  ;;  %s2931_s18 = scalar_lea.hbm %s2930_s24, 32  ;;  %p2936_p5 = scmp.lt.s32.totalorder %s2930_s24, %s3738_s16 }
  0x88   : > { %v554_v47 = vmul.f32 %v3430_v29, %v3357_v11  ;;  %v562_v48 = vmul.f32 %v3426_v27, %v3363_v15  ;;  %v608_v49 = vadd.f32 %v600_v34, %v592_v31  ;;  %v555_v51 = vmul.f32 %v3432_v30, %v3359_v12  ;;  %p2932_p12 = scmp.ne.s32.totalorder %s2930_s24, %s2931_s18  ;;  %p2937_p2 = scmp.lt.s32.totalorder %s2935_s10, %s2931_s18 }
  0x89   : > { %v609_v50 = vadd.f32 %v601_v35, %v593_v33  ;;  %v563_v52 = vmul.f32 %v3428_v28, %v3365_v16  ;;  %v635_v53 = vpack.c.b16 %v629_v40, %v628_v36  ;;  %v703_v54 = vpack.c.b16 %v697_v42, %v696_v41 }
  0x8a   : > { %v546_v55 = vsub.f32 %v530_v43, %v538_v45  ;;  %v570_v56 = vadd.f32 %v562_v48, %v554_v47  ;;  %v547_v58 = vsub.f32 %v531_v44, %v539_v46  ;;  %v3455_v4 = vunpack.c.l.bf16 %v2583_v62  ;;  %p2933_p13 = pnand %p2932_p12, %p3230_p7  ;;  %p2938_p8 = por %p2937_p2, %p2936_p5 }
  0x8b   : > { %v615_v57 = vpack.c.bf16 %v609_v50, %v608_v49  ;;  %v571_v59 = vadd.f32 %v563_v52, %v555_v51  ;;  %v3457_v5 = vunpack.c.h.bf16 %v2583_v62  ;;  %v3459_v8 = vunpack.c.l.bf16 %v2587_v3 }
  0x8c   : > { %v578_v60 = vpack.c.bf16 %v546_v55, %v546_v55  ;;  %v586_v61 = vpack.c.bf16 %v570_v56, %v570_v56  ;;  %v579_v63 = vpack.c.bf16 %v547_v58, %v547_v58  ;;  %v3461_v9 = vunpack.c.h.bf16 %v2587_v3  ;;  %p2934_p0 = pneg %p2933_p13 }
  0x8d   : > { %v587_v0 = vpack.c.bf16 %v571_v59, %v571_v59  ;;  %v532_v26 = vmul.f32 %v3455_v4, %v3357_v11  ;;  %v533_v31 = vmul.f32 %v3457_v5, %v3359_v12  ;;  %v540_v34 = vmul.f32 %v3459_v8, %v3363_v15 }
  0x8e   : > { %v594_v6 = vunpack.c.l.bf16 %v578_v60  ;;  %v602_v7 = vunpack.c.l.bf16 %v586_v61  ;;  %v595_v10 = vunpack.c.l.bf16 %v579_v63  ;;  %v630_v14 = vunpack.c.l.b16 %v578_v60  ;;  %p2939_p11 = pnand %p2938_p8, %p2934_p0 }
  0x8f   : > { %v603_v13 = vunpack.c.l.bf16 %v587_v0  ;;  %v631_v19 = vunpack.c.l.b16 %v579_v63  ;;  %v698_v20 = vunpack.c.l.b16 %v586_v61  ;;  %v699_v21 = vunpack.c.l.b16 %v587_v0 }
  0x90   : > { %v610_v33 = vadd.f32 %v602_v7, %v594_v6  ;;  %v541_v35 = vmul.f32 %v3461_v9, %v3365_v16  ;;  %v556_v36 = vmul.f32 %v3459_v8, %v3357_v11  ;;  %v557_v41 = vmul.f32 %v3461_v9, %v3359_v12 }
  0x91   : > { %v611_v40 = vadd.f32 %v603_v13, %v595_v10  ;;  %v564_v42 = vmul.f32 %v3455_v4, %v3363_v15  ;;  %v565_v43 = vmul.f32 %v3457_v5, %v3365_v16  ;;  %v636_v44 = vpack.c.b16 %v631_v19, %v630_v14 }
  0x92   : > { %v704_v45 = vpack.c.b16 %v699_v21, %v698_v20  ;;  %v548_v46 = vsub.f32 %v532_v26, %v540_v34  ;;  %v549_v48 = vsub.f32 %v533_v31, %v541_v35 }
  0x93   : > { %2424 = vmatmul.msk.bf16.gmra.mxu0 %vm644_vm1, %v635_v53  ;;  %2432 = vmatmul.msk.bf16.gmra.mxu1 %vm644_vm1, %v703_v54  ;;  %v616_v47 = vpack.c.bf16 %v611_v40, %v610_v33  ;;  %v572_v49 = vadd.f32 %v564_v42, %v556_v36  ;;  %v573_v50 = vadd.f32 %v565_v43, %v557_v41 }
  0x94   : > { %v580_v11 = vpack.c.bf16 %v548_v46, %v548_v46  ;;  %v581_v12 = vpack.c.bf16 %v549_v48, %v549_v48 }
  0x95   : > { %v588_v51 = vpack.c.bf16 %v572_v49, %v572_v49  ;;  %v589_v15 = vpack.c.bf16 %v573_v50, %v573_v50 }
  0x96   : > { %2436 = vmatmul.msk.bf16.gmra.mxu2 %vm644_vm1, %v615_v57  ;;  %v596_v52 = vunpack.c.l.bf16 %v580_v11  ;;  %v597_v53 = vunpack.c.l.bf16 %v581_v12  ;;  %v632_v55 = vunpack.c.l.b16 %v580_v11  ;;  %v633_v56 = vunpack.c.l.b16 %v581_v12 }
  0x97   : > { %v604_v16 = vunpack.c.l.bf16 %v588_v51  ;;  %v605_v54 = vunpack.c.l.bf16 %v589_v15  ;;  %v700_v57 = vunpack.c.l.b16 %v588_v51  ;;  %v701_v58 = vunpack.c.l.b16 %v589_v15  ;;  %v2504_v15 = vld [vmem:[%s3735_s2 + $0x8] sm:$0xff] }
  0x98   : > { %v637_v61 = vpack.c.b16 %v633_v56, %v632_v55  ;;  %1230 = vmatpush.bf16.msrb.mxu0 %v2504_v15 }
  0x99   : > { %v612_v59 = vadd.f32 %v604_v16, %v596_v52  ;;  %v613_v60 = vadd.f32 %v605_v54, %v597_v53  ;;  %v705_v62 = vpack.c.b16 %v701_v58, %v700_v57  ;;  %v454_v52 = vld [vmem:[%s3735_s2] sm:$0xff]   ;;  %v2407_v53 = vld [vmem:[%s3735_s2 + $0x8] sm:$0xff]  }
  0x9a   : > { %v464_v54 = vunpack.c.l.bf16 %v454_v52  ;;  %v465_v55 = vunpack.c.h.bf16 %v454_v52  ;;  %v466_v56 = vunpack.c.l.bf16 %v2407_v53  ;;  %v467_v58 = vunpack.c.h.bf16 %v2407_v53 }
  0x9b   : > { %v617_v63 = vpack.c.bf16 %v613_v60, %v612_v59 }
  0x9c   : > { %v468_v59 = vadd.f32 %v466_v56, %v464_v54  ;;  %v3494_v60 = vsub.f32 %v464_v54, %v466_v56 }
  0xa3   : > { %2425 = vmatmul.msk.bf16.gmra.mxu0 %vm644_vm1, %v636_v44  ;;  %2433 = vmatmul.msk.bf16.gmra.mxu1 %vm644_vm1, %v704_v45 }
  0xa6   : > { %2437 = vmatmul.msk.bf16.gmra.mxu2 %vm644_vm1, %v616_v47 }
  0xb3   : > { %2426 = vmatmul.msk.bf16.gmra.mxu0 %vm644_vm1, %v637_v61  ;;  %2434 = vmatmul.msk.bf16.gmra.mxu1 %vm644_vm1, %v705_v62 }
  0xb6   : > { %2438 = vmatmul.msk.bf16.gmra.mxu2 %vm644_vm1, %v617_v63 }
 0x100   : > { %v666_v0 = vpop.f32.mrf.mxu0  ;;  %v733_v3 = vpop.f32.mrf.mxu1 }
 0x101   : > { %v794_v14 = vsub.f32 %v666_v0, %v733_v3 }
 0x108   : > { %v668_v6 = vpop.f32.mrf.mxu0  ;;  %v735_v7 = vpop.f32.mrf.mxu1 }
 0x109   : > { %v774_v10 = vpop.f32.mrf.mxu2  ;;  %v795_v34 = vsub.f32 %v668_v6, %v735_v7 }
 0x10a   : > { %v802_v13 = vsub.f32 %v774_v10, %v666_v0  ;;  %v469_v0 = vadd.f32 %v467_v58, %v465_v55 }
 0x10c   : > { %v810_v19 = vsub.f32 %v802_v13, %v733_v3  ;;  %v3496_v3 = vsub.f32 %v465_v55, %v467_v58  ;;  %v470_v10 = vpack.c.bf16 %v469_v0, %v468_v59 }
 0x10e   : > { %v2742_v20 = vpack.i.bf16 %v810_v19, %v794_v14  ;;  %1271 = vmatpush.bf16.msrb.mxu1 %v470_v10 }
 0x110   : > { %2743 = vxpose.xlu0.b32.start [1/2] (short) (narrow) %v2742_v20, 16  ;;  %v671_v21 = vpop.f32.mrf.mxu0  ;;  %v738_v26 = vpop.f32.mrf.mxu1 }
 0x111   : > { %v776_v31 = vpop.f32.mrf.mxu2  ;;  %v796_v44 = vsub.f32 %v671_v21, %v738_v26 }
 0x112   : > { %v803_v33 = vsub.f32 %v776_v31, %v668_v6  ;;  %1980 = vmatpush.bf16.msra.mxu1 %v3351_v1 }
 0x114   : > { %v811_v35 = vsub.f32 %v803_v33, %v735_v7 }
 0x116   : > { %v2744_v36 = vpack.i.bf16 %v811_v35, %v795_v34 }
 0x118   : > { %2745 = vxpose.xlu0.b32.end [2/2] (short) (narrow) %v2744_v36, 16  ;;  %v673_v40 = vpop.f32.mrf.mxu0  ;;  %v740_v41 = vpop.f32.mrf.mxu1 }
 0x119   : > { %v779_v42 = vpop.f32.mrf.mxu2  ;;  %v797_v11 = vsub.f32 %v673_v40, %v740_v41 }
 0x11a   : > { %v804_v43 = vsub.f32 %v779_v42, %v671_v21 }
 0x11c   : > { %v812_v45 = vsub.f32 %v804_v43, %v738_v26 }
 0x11e   : > { %v2756_v46 = vpack.i.bf16 %v812_v45, %v796_v44 }
 0x120   : > { %2757 = vxpose.xlu1.b32.start [1/2] (short) (narrow) %v2756_v46, 16  ;;  %v676_v48 = vpop.f32.mrf.mxu0  ;;  %v743_v50 = vpop.f32.mrf.mxu1 }
 0x121   : > { %v781_v47 = vpop.f32.mrf.mxu2  ;;  %v798_v61 = vsub.f32 %v676_v48, %v743_v50 }
 0x122   : > { %v805_v49 = vsub.f32 %v781_v47, %v673_v40  ;;  %v2503_v47 = vld [vmem:[%s3735_s2] sm:$0xff] }
 0x123   : > { %1163 = vmatpush.bf16.msra.mxu3 %v2503_v47  ;;  %1493 = vmatpush.bf16.msrb.mxu2 %v2503_v47 }
 0x124   : > { %v813_v12 = vsub.f32 %v805_v49, %v740_v41 }
 0x126   : > { %v2758_v51 = vpack.i.bf16 %v813_v12, %v797_v11  ;;  %v1317_v11 = vld [vmem:[%s3736_s19] sm:$0xff]  ;;  %v3069_v12 = vmov 0  }
 0x127   : > { %1554 = vmatpush.bf16.msrb.mxu3 %v2504_v15  ;;  %2041 = vmatpush.bf16.msra.mxu2 %v3353_v2 }
 0x128   : > { %2759 = vxpose.xlu1.b32.end [2/2] (short) (narrow) %v2758_v51, 16  ;;  %v678_v62 = vpop.f32.mrf.mxu0  ;;  %v745_v6 = vpop.f32.mrf.mxu1 }
 0x129   : > { %v784_v16 = vpop.f32.mrf.mxu2  ;;  %v799_v19 = vsub.f32 %v678_v62, %v745_v6 }
 0x12a   : > { %v806_v57 = vsub.f32 %v784_v16, %v676_v48 }
 0x12c   : > { %v814_v63 = vsub.f32 %v806_v57, %v743_v50 }
 0x12e   : > { %v2770_v7 = vpack.i.bf16 %v814_v63, %v798_v61 }
 0x130   : > { %2771 = vxpose.xlu2.b32.start [1/2] (short) (narrow) %v2770_v7, 16  ;;  %v681_v21 = vpop.f32.mrf.mxu0  ;;  %v748_v31 = vpop.f32.mrf.mxu1 }
 0x131   : > { %v786_v13 = vpop.f32.mrf.mxu2  ;;  %v800_v35 = vsub.f32 %v681_v21, %v748_v31 }
 0x132   : > { %v807_v14 = vsub.f32 %v786_v13, %v678_v62 }
 0x134   : > { %v815_v20 = vsub.f32 %v807_v14, %v745_v6 }
 0x136   : > { %v2772_v26 = vpack.i.bf16 %v815_v20, %v799_v19 }
 0x138   : > { %2773 = vxpose.xlu2.b32.end [2/2] (short) (narrow) %v2772_v26, 16  ;;  %v683_v41 = vpop.f32.mrf.mxu0  ;;  %v750_v42 = vpop.f32.mrf.mxu1 }
 0x139   : > { %v789_v33 = vpop.f32.mrf.mxu2  ;;  %v801_v45 = vsub.f32 %v683_v41, %v750_v42 }
 0x13a   : > { %v808_v34 = vsub.f32 %v789_v33, %v681_v21 }
 0x13c   : > { %v816_v36 = vsub.f32 %v808_v34, %v748_v31 }
 0x13e   : > { %v2784_v40 = vpack.i.bf16 %v816_v36, %v800_v35 }
 0x140   : > { %2785 = vxpose.xlu0.b32.start [1/2] (short) (narrow) %v2784_v40, 16 }
 0x141   : > { %v791_v43 = vpop.f32.mrf.mxu2 }
 0x142   : > { %v809_v44 = vsub.f32 %v791_v43, %v683_v41 }
 0x144   : > { %v817_v46 = vsub.f32 %v809_v44, %v750_v42 }
 0x146   : > { %v2786_v1 = vpack.i.bf16 %v817_v46, %v801_v45 }
 0x148   : > { %2787 = vxpose.xlu0.b32.end [2/2] (short) (narrow) %v2786_v1, 16 }
 0x17b   : > { %2798 = vset.pattern.permute.xlu1 %v3069_v12 }
 0x182   : > { %1362 = vperm.xlu1 %2798, %v1317_v11  }
 0x19a   : > { %2799 = vset.pattern.permute.xlu2 %v3069_v12 }
 0x1b4   : > { %v2746_v48 = vpop.trf.xlu0 }
 0x1b5   : > { %v2750_v49 = vunpack.i.h.bf16 %v2746_v48  ;;  %v2747_v50 = vunpack.i.l.bf16 %v2746_v48 }
 0x1b7   : > { %v1082_v51 = vpack.c.bf16 %v2750_v49, %v2750_v49  ;;  %v1074_v52 = vpack.c.bf16 %v2747_v50, %v2747_v50 }
 0x1b9   : > { %v1098_v55 = vunpack.c.l.bf16 %v1082_v51  ;;  %v1193_v56 = vunpack.c.l.b16 %v1082_v51  ;;  %v1090_v57 = vunpack.c.l.bf16 %v1074_v52  ;;  %v1126_v58 = vunpack.c.l.b16 %v1074_v52 }
 0x1bb   : > { %v1106_v13 = vadd.f32 %v1098_v55, %v1090_v57  ;;  %v473_v55 = vpack.c.bf16 %v3496_v3, %v3494_v60 }
 0x1bc   : > { %v2751_v53 = vpop.trf.xlu0 }
 0x1bd   : > { %v2755_v16 = vunpack.i.h.bf16 %v2751_v53  ;;  %v2752_v15 = vunpack.i.l.bf16 %v2751_v53  ;;  %1595 = vmatpush.bf16.msra.mxu0 %v473_v55 }
 0x1bf   : > { %v1083_v54 = vpack.c.bf16 %v2755_v16, %v2755_v16  ;;  %v1075_v2 = vpack.c.bf16 %v2752_v15, %v2752_v15 }
 0x1c1   : > { %v1099_v59 = vunpack.c.l.bf16 %v1083_v54  ;;  %v1194_v61 = vunpack.c.l.b16 %v1083_v54  ;;  %v1091_v62 = vunpack.c.l.bf16 %v1075_v2  ;;  %v1127_v63 = vunpack.c.l.b16 %v1075_v2  ;;  %v1318_v2 = vld [vmem:[%s3736_s19 + $0x8] sm:$0xff] }
 0x1c2   : > { %1367 = vperm.xlu2 %2799, %v1318_v2   ;;  %v2591_v2 = vld [vmem:[%s3337_s11 + $0x20] sm:$0xff]  }
 0x1c3   : > { %v1134_v0 = vpack.c.b16 %v1127_v63, %v1126_v58  ;;  %v1201_v6 = vpack.c.b16 %v1194_v61, %v1193_v56  ;;  %v1107_v7 = vadd.f32 %v1099_v59, %v1091_v62 }
 0x1c4   : > { %v2760_v10 = vpop.trf.xlu1 }
 0x1c5   : > { %2443 = vmatmul.msk.bf16.vlgmr.msra.gmra.mxu3 %vm644_vm1, %v1134_v0  ;;  %2451 = vmatmul.msk.bf16.vlgmr.msrb.gmra.mxu0 %vm644_vm1, %v1201_v6  ;;  %v1114_v14 = vpack.c.bf16 %v1107_v7, %v1106_v13  ;;  %v2764_v19 = vunpack.i.h.bf16 %v2760_v10  ;;  %v2761_v20 = vunpack.i.l.bf16 %v2760_v10 }
 0x1c7   : > { %2455 = vmatmul.msk.bf16.vlgmr.msrb.gmra.mxu1 %vm644_vm1, %v1114_v14  ;;  %v1084_v26 = vpack.c.bf16 %v2764_v19, %v2764_v19  ;;  %v1076_v31 = vpack.c.bf16 %v2761_v20, %v2761_v20 }
 0x1c9   : > { %v2774_v21 = vpop.trf.xlu2  ;;  %v1092_v41 = vunpack.c.l.bf16 %v1076_v31  ;;  %v1100_v42 = vunpack.c.l.bf16 %v1084_v26  ;;  %v1128_v43 = vunpack.c.l.b16 %v1076_v31  ;;  %v1195_v44 = vunpack.c.l.b16 %v1084_v26 }
 0x1ca   : > { %v2778_v53 = vunpack.i.h.bf16 %v2774_v21  ;;  %v2775_v16 = vunpack.i.l.bf16 %v2774_v21 }
 0x1cb   : > { %v1108_v11 = vadd.f32 %v1100_v42, %v1092_v41 }
 0x1cc   : > { %v2765_v33 = vpop.trf.xlu1  ;;  %v1086_v56 = vpack.c.bf16 %v2778_v53, %v2778_v53  ;;  %v1078_v57 = vpack.c.bf16 %v2775_v16, %v2775_v16 }
 0x1cd   : > { %v2769_v34 = vunpack.i.h.bf16 %v2765_v33  ;;  %v2766_v35 = vunpack.i.l.bf16 %v2765_v33 }
 0x1ce   : > { %v1094_v61 = vunpack.c.l.bf16 %v1078_v57  ;;  %v1102_v63 = vunpack.c.l.bf16 %v1086_v56  ;;  %v1130_v6 = vunpack.c.l.b16 %v1078_v57  ;;  %v1197_v10 = vunpack.c.l.b16 %v1086_v56 }
 0x1cf   : > { %v1085_v36 = vpack.c.bf16 %v2769_v34, %v2769_v34  ;;  %v1077_v40 = vpack.c.bf16 %v2766_v35, %v2766_v35 }
 0x1d0   : > { %v1110_v14 = vadd.f32 %v1102_v63, %v1094_v61 }
 0x1d1   : > { %v2779_v45 = vpop.trf.xlu2  ;;  %v1129_v46 = vunpack.c.l.b16 %v1077_v40  ;;  %v1196_v1 = vunpack.c.l.b16 %v1085_v36  ;;  %v1093_v47 = vunpack.c.l.bf16 %v1077_v40  ;;  %v1101_v48 = vunpack.c.l.bf16 %v1085_v36 }
 0x1d2   : > { %v2783_v15 = vunpack.i.h.bf16 %v2779_v45  ;;  %v2780_v54 = vunpack.i.l.bf16 %v2779_v45 }
 0x1d3   : > { %v1135_v49 = vpack.c.b16 %v1129_v46, %v1128_v43  ;;  %v1202_v50 = vpack.c.b16 %v1196_v1, %v1195_v44  ;;  %v1109_v51 = vadd.f32 %v1101_v48, %v1093_v47 }
 0x1d4   : > { %v1087_v58 = vpack.c.bf16 %v2783_v15, %v2783_v15  ;;  %v1079_v59 = vpack.c.bf16 %v2780_v54, %v2780_v54  ;;  %v2549_v15 = vld [vmem:[%s3337_s11] sm:$0xff]  }
 0x1d5   : > { %2444 = vmatmul.msk.bf16.gmra.mxu3 %vm644_vm1, %v1135_v49  ;;  %2452 = vmatmul.msk.bf16.gmra.mxu0 %vm644_vm1, %v1202_v50  ;;  %v1115_v52 = vpack.c.bf16 %v1109_v51, %v1108_v11  ;;  %v2550_v55 = vunpack.c.l.bf16 %v2549_v15 }
 0x1d6   : > { %v1095_v62 = vunpack.c.l.bf16 %v1079_v59  ;;  %v1103_v0 = vunpack.c.l.bf16 %v1087_v58  ;;  %v1131_v7 = vunpack.c.l.b16 %v1079_v59  ;;  %v1198_v13 = vunpack.c.l.b16 %v1087_v58 }
 0x1d7   : > { %2456 = vmatmul.msk.bf16.gmra.mxu1 %vm644_vm1, %v1115_v52  ;;  %v2566_v59 = vunpack.c.l.bf16 %v2591_v2 }
 0x1d8   : > { %v1111_v19 = vadd.f32 %v1103_v0, %v1095_v62  ;;  %v1136_v20 = vpack.c.b16 %v1131_v7, %v1130_v6  ;;  %v1203_v21 = vpack.c.b16 %v1198_v13, %v1197_v10  ;;  %v2551_v10 = vunpack.c.h.bf16 %v2549_v15 }
 0x1da   : > { %v1116_v60 = vpack.c.bf16 %v1111_v19, %v1110_v14 }
 0x1e4   : > { %v2788_v26 = vpop.trf.xlu0 }
 0x1e5   : > { %2445 = vmatmul.msk.bf16.gmra.mxu3 %vm644_vm1, %v1136_v20  ;;  %2453 = vmatmul.msk.bf16.gmra.mxu0 %vm644_vm1, %v1203_v21  ;;  %v2792_v3 = vunpack.i.h.bf16 %v2788_v26  ;;  %v2789_v31 = vunpack.i.l.bf16 %v2788_v26  ;;  %v2567_v26 = vunpack.c.h.bf16 %v2591_v2 }
 0x1e7   : > { %2457 = vmatmul.msk.bf16.gmra.mxu1 %vm644_vm1, %v1116_v60  ;;  %v1088_v33 = vpack.c.bf16 %v2792_v3, %v2792_v3  ;;  %v1080_v34 = vpack.c.bf16 %v2789_v31, %v2789_v31 }
 0x1e9   : > { %v1096_v43 = vunpack.c.l.bf16 %v1080_v34  ;;  %v1104_v44 = vunpack.c.l.bf16 %v1088_v33  ;;  %v1132_v45 = vunpack.c.l.b16 %v1080_v34  ;;  %v1199_v46 = vunpack.c.l.b16 %v1088_v33 }
 0x1eb   : > { %v1112_v51 = vadd.f32 %v1104_v44, %v1096_v43 }
 0x1ec   : > { %v2793_v35 = vpop.trf.xlu0 }
 0x1ed   : > { %v2797_v36 = vunpack.i.h.bf16 %v2793_v35  ;;  %v2794_v40 = vunpack.i.l.bf16 %v2793_v35  ;;  %v2588_v35 = vld [vmem:[%s3337_s11 + $0x8] sm:$0xff]  }
 0x1ee   : > { %v2554_v44 = vunpack.c.l.bf16 %v2588_v35 }
 0x1ef   : > { %v1089_v41 = vpack.c.bf16 %v2797_v36, %v2797_v36  ;;  %v1081_v42 = vpack.c.bf16 %v2794_v40, %v2794_v40 }
 0x1f1   : > { %v1133_v1 = vunpack.c.l.b16 %v1081_v42  ;;  %v1200_v47 = vunpack.c.l.b16 %v1089_v41  ;;  %v1097_v48 = vunpack.c.l.bf16 %v1081_v42  ;;  %v1105_v49 = vunpack.c.l.bf16 %v1089_v41  ;;  %v2592_v42 = vld [vmem:[%s3337_s11 + $0x28] sm:$0xff]  }
 0x1f3   : > { %v1137_v50 = vpack.c.b16 %v1133_v1, %v1132_v45  ;;  %v1204_v11 = vpack.c.b16 %v1200_v47, %v1199_v46  ;;  %v1113_v52 = vadd.f32 %v1105_v49, %v1097_v48  ;;  %v2570_v48 = vunpack.c.l.bf16 %v2592_v42 }
 0x1f4   : > { %v3527_v0 = vpop.permute.xlu1 %1362 }
 0x1f5   : > { %2446 = vmatmul.msk.bf16.gmra.mxu3 %vm644_vm1, %v1137_v50  ;;  %2454 = vmatmul.msk.bf16.gmra.mxu0 %vm644_vm1, %v1204_v11  ;;  %v1117_v53 = vpack.c.bf16 %v1113_v52, %v1112_v51 }
 0x1f7   : > { %2458 = vmatmul.msk.bf16.gmra.mxu1 %vm644_vm1, %v1117_v53 }
 0x21c   : > { %v3531_v3 = vpop.permute.xlu2 %1367 }
 0x242   : > { %v1232_v16 = vpop.f32.mrf.mxu0 }
 0x244   : > { %v1273_v54 = vpop.f32.mrf.mxu1 }
 0x248   : > { %v1165_v56 = vpop.f32.mrf.mxu3 }
 0x249   : > { %v1293_v57 = vsub.f32 %v1165_v56, %v1232_v16  ;;  %v1301_v58 = vsub.f32 %v1273_v54, %v1165_v56 }
 0x24a   : > { %v1234_v61 = vpop.f32.mrf.mxu0 }
 0x24b   : > { %v1309_v62 = vsub.f32 %v1301_v58, %v1232_v16  ;;  %v1352_v63 = vsub.f32 %v1293_v57, %v2550_v55 }
 0x24c   : > { %v1275_v7 = vpop.f32.mrf.mxu1 }
 0x24d   : > { %v1386_v6 = vsub.f32 %v1309_v62, %v2566_v59  ;;  %v1370_v13 = vmul.f32 %v3527_v0, %v1352_v63 }
 0x24f   : > { %v1394_v19 = vmul.f32 %v1386_v6, %v3527_v0  ;;  %v1378_v34 = vsub.f32 %v1293_v57, %v1370_v13  ;;  %v2555_v13 = vunpack.c.h.bf16 %v2588_v35 }
 0x250   : > { %v1167_v14 = vpop.f32.mrf.mxu3 }
 0x251   : > { %v1294_v20 = vsub.f32 %v1167_v14, %v1234_v61  ;;  %v1302_v21 = vsub.f32 %v1275_v7, %v1167_v14  ;;  %v1402_v36 = vsub.f32 %v1309_v62, %v1394_v19  ;;  %v1410_v46 = vpack.c.bf16 %v1378_v34, %v1378_v34 }
 0x252   : > { %v1237_v60 = vpop.f32.mrf.mxu0 }
 0x253   : > { %v1310_v31 = vsub.f32 %v1302_v21, %v1234_v61  ;;  %v1353_v33 = vsub.f32 %v1294_v20, %v2551_v10  ;;  %v1418_v49 = vpack.c.bf16 %v1402_v36, %v1402_v36  ;;  %v1462_v54 = vunpack.c.l.b16 %v1410_v46 }
 0x254   : > { %v1278_v41 = vpop.f32.mrf.mxu1  ;;  %v1426_v59 = vunpack.c.l.bf16 %v1410_v46 }
 0x255   : > { %v1387_v40 = vsub.f32 %v1310_v31, %v2567_v26  ;;  %v1371_v43 = vmul.f32 %v3531_v3, %v1353_v33  ;;  %v1434_v56 = vunpack.c.l.bf16 %v1418_v49  ;;  %v1523_v6 = vunpack.c.l.b16 %v1418_v49 }
 0x256   : > { %v2571_v33 = vunpack.c.h.bf16 %v2592_v42 }
 0x257   : > { %v1379_v45 = vsub.f32 %v1294_v20, %v1371_v43  ;;  %v1395_v1 = vmul.f32 %v1387_v40, %v3531_v3  ;;  %v1442_v21 = vadd.f32 %v1434_v56, %v1426_v59 }
 0x258   : > { %v1170_v47 = vpop.f32.mrf.mxu3 }
 0x259   : > { %v1295_v50 = vsub.f32 %v1170_v47, %v1237_v60  ;;  %v1303_v11 = vsub.f32 %v1278_v41, %v1170_v47  ;;  %v1411_v51 = vpack.c.bf16 %v1379_v45, %v1379_v45  ;;  %v1403_v52 = vsub.f32 %v1310_v31, %v1395_v1  ;;  %v2589_v1 = vld [vmem:[%s3337_s11 + $0x10] sm:$0xff]  }
 0x25a   : > { %v1239_v53 = vpop.f32.mrf.mxu0  ;;  %v2593_v47 = vld [vmem:[%s3337_s11 + $0x30] sm:$0xff]  }
 0x25b   : > { %v1311_v16 = vsub.f32 %v1303_v11, %v1237_v60  ;;  %v1354_v15 = vsub.f32 %v1295_v50, %v2554_v44  ;;  %v1463_v2 = vunpack.c.l.b16 %v1411_v51  ;;  %v1419_v55 = vpack.c.bf16 %v1403_v52, %v1403_v52 }
 0x25c   : > { %v1280_v58 = vpop.f32.mrf.mxu1  ;;  %v1427_v62 = vunpack.c.l.bf16 %v1411_v51  ;;  %v2558_v52 = vunpack.c.l.bf16 %v2589_v1 }
 0x25d   : > { %v1388_v57 = vsub.f32 %v1311_v16, %v2570_v48  ;;  %v1470_v61 = vpack.c.b16 %v1463_v2, %v1462_v54  ;;  %v1435_v63 = vunpack.c.l.bf16 %v1419_v55  ;;  %v1524_v7 = vunpack.c.l.b16 %v1419_v55 }
 0x25e   : > { %v1372_v10 = vmul.f32 %v3527_v0, %v1354_v15  ;;  %v2574_v15 = vunpack.c.l.bf16 %v2593_v47 }
 0x25f   : > { %2467 = vmatmul.msk.bf16.vlgmr.msrb.gmra.mxu2 %vm644_vm1, %v1470_v61  ;;  %v1396_v14 = vmul.f32 %v1388_v57, %v3527_v0  ;;  %v1531_v20 = vpack.c.b16 %v1524_v7, %v1523_v6  ;;  %v1443_v26 = vadd.f32 %v1435_v63, %v1427_v62 }
 0x260   : > { %v1172_v19 = vpop.f32.mrf.mxu3  ;;  %v1380_v40 = vsub.f32 %v1295_v50, %v1372_v10 }
 0x261   : > { %v1296_v60 = vsub.f32 %v1172_v19, %v1239_v53  ;;  %v1304_v31 = vsub.f32 %v1280_v58, %v1172_v19  ;;  %2471 = vmatmul.msk.bf16.vlgmr.msrb.gmra.mxu3 %vm644_vm1, %v1531_v20  ;;  %v1450_v36 = vpack.c.bf16 %v1443_v26, %v1442_v21  ;;  %v1404_v44 = vsub.f32 %v1311_v16, %v1396_v14 }
 0x262   : > { %v1242_v34 = vpop.f32.mrf.mxu0  ;;  %v1412_v48 = vpack.c.bf16 %v1380_v40, %v1380_v40  ;;  %v2559_v20 = vunpack.c.h.bf16 %v2589_v1  ;;  %v2590_v1 = vld [vmem:[%s3337_s11 + $0x18] sm:$0xff]  }
 0x263   : > { %v1312_v41 = vsub.f32 %v1304_v31, %v1239_v53  ;;  %v1355_v43 = vsub.f32 %v1296_v60, %v2555_v13  ;;  %2475 = vmatmul.msk.bf16.vlgmr.msra.gmra.mxu0 %vm644_vm1, %v1450_v36  ;;  %v1420_v11 = vpack.c.bf16 %v1404_v44, %v1404_v44 }
 0x264   : > { %v1283_v46 = vpop.f32.mrf.mxu1  ;;  %v1464_v57 = vunpack.c.l.b16 %v1412_v48  ;;  %v1428_v14 = vunpack.c.l.bf16 %v1412_v48 }
 0x265   : > { %v1373_v35 = vmul.f32 %v3531_v3, %v1355_v43  ;;  %v1389_v45 = vsub.f32 %v1312_v41, %v2571_v33  ;;  %v1525_v61 = vunpack.c.l.b16 %v1420_v11  ;;  %v1436_v62 = vunpack.c.l.bf16 %v1420_v11  ;;  %v2594_v11 = vld [vmem:[%s3337_s11 + $0x38] sm:$0xff]  }
 0x267   : > { %v1381_v49 = vsub.f32 %v1296_v60, %v1373_v35  ;;  %v1397_v42 = vmul.f32 %v1389_v45, %v3531_v3 }
 0x268   : > { %v1175_v51 = vpop.f32.mrf.mxu3 }
 0x269   : > { %v1405_v50 = vsub.f32 %v1312_v41, %v1397_v42  ;;  %v1413_v53 = vpack.c.bf16 %v1381_v49, %v1381_v49  ;;  %v1297_v54 = vsub.f32 %v1175_v51, %v1242_v34  ;;  %v1305_v16 = vsub.f32 %v1283_v46, %v1175_v51 }
 0x26a   : > { %v1244_v56 = vpop.f32.mrf.mxu0  ;;  %v2575_v41 = vunpack.c.h.bf16 %v2593_v47  ;;  %v2562_v47 = vunpack.c.l.bf16 %v2590_v1 }
 0x26b   : > { %v1421_v2 = vpack.c.bf16 %v1405_v50, %v1405_v50  ;;  %v1313_v55 = vsub.f32 %v1305_v16, %v1242_v34  ;;  %v1356_v58 = vsub.f32 %v1297_v54, %v2558_v52  ;;  %v1465_v59 = vunpack.c.l.b16 %v1413_v53 }
 0x26c   : > { %v1429_v63 = vunpack.c.l.bf16 %v1413_v53  ;;  %v1285_v7 = vpop.f32.mrf.mxu1  ;;  %v1444_v34 = vadd.f32 %v1436_v62, %v1428_v14 }
 0x26d   : > { %v1390_v6 = vsub.f32 %v1313_v55, %v2574_v15  ;;  %v1526_v10 = vunpack.c.l.b16 %v1421_v2  ;;  %v1437_v13 = vunpack.c.l.bf16 %v1421_v2  ;;  %v1471_v19 = vpack.c.b16 %v1465_v59, %v1464_v57 }
 0x26e   : > { %v1374_v60 = vmul.f32 %v3527_v0, %v1356_v58  ;;  %v2578_v2 = vunpack.c.l.bf16 %v2594_v11 }
 0x26f   : > { %v1532_v21 = vpack.c.b16 %v1526_v10, %v1525_v61  ;;  %v1445_v26 = vadd.f32 %v1437_v13, %v1429_v63  ;;  %v1398_v31 = vmul.f32 %v1390_v6, %v3527_v0  ;;  %2468 = vmatmul.msk.bf16.gmra.mxu2 %vm644_vm1, %v1471_v19 }
 0x270   : > { %v1177_v33 = vpop.f32.mrf.mxu3  ;;  %v1382_v45 = vsub.f32 %v1297_v54, %v1374_v60 }
 0x271   : > { %v1298_v36 = vsub.f32 %v1177_v33, %v1244_v56  ;;  %v1306_v40 = vsub.f32 %v1285_v7, %v1177_v33  ;;  %2472 = vmatmul.msk.bf16.gmra.mxu3 %vm644_vm1, %v1532_v21  ;;  %v1451_v43 = vpack.c.bf16 %v1445_v26, %v1444_v34  ;;  %v1406_v46 = vsub.f32 %v1313_v55, %v1398_v31 }
 0x272   : > { %v1247_v42 = vpop.f32.mrf.mxu0  ;;  %v1414_v50 = vpack.c.bf16 %v1382_v45, %v1382_v45  ;;  %v2563_v26 = vunpack.c.h.bf16 %v2590_v1  ;;  %v2579_v45 = vunpack.c.h.bf16 %v2594_v11 }
 0x273   : > { %v1314_v44 = vsub.f32 %v1306_v40, %v1244_v56  ;;  %v1357_v35 = vsub.f32 %v1298_v36, %v2559_v20  ;;  %2476 = vmatmul.msk.bf16.gmra.mxu0 %vm644_vm1, %v1451_v43  ;;  %v1422_v53 = vpack.c.bf16 %v1406_v46, %v1406_v46 }
 0x274   : > { %v1288_v51 = vpop.f32.mrf.mxu1  ;;  %v1466_v62 = vunpack.c.l.b16 %v1414_v50  ;;  %v1430_v20 = vunpack.c.l.bf16 %v1414_v50 }
 0x275   : > { %v1375_v48 = vmul.f32 %v3531_v3, %v1357_v35  ;;  %v1391_v49 = vsub.f32 %v1314_v44, %v2575_v41  ;;  %v1527_v6 = vunpack.c.l.b16 %v1422_v53  ;;  %v1438_v7 = vunpack.c.l.bf16 %v1422_v53 }
 0x277   : > { %v1383_v52 = vsub.f32 %v1298_v36, %v1375_v48  ;;  %v1399_v15 = vmul.f32 %v1391_v49, %v3531_v3  ;;  %v1446_v43 = vadd.f32 %v1438_v7, %v1430_v20 }
 0x278   : > { %v1180_v16 = vpop.f32.mrf.mxu3 }
 0x279   : > { %v1407_v56 = vsub.f32 %v1314_v44, %v1399_v15  ;;  %v1415_v54 = vpack.c.bf16 %v1383_v52, %v1383_v52  ;;  %v1299_v55 = vsub.f32 %v1180_v16, %v1247_v42  ;;  %v1307_v57 = vsub.f32 %v1288_v51, %v1180_v16 }
 0x27a   : > { %v1249_v33 = vpop.f32.mrf.mxu0 }
 0x27b   : > { %v1423_v58 = vpack.c.bf16 %v1407_v56, %v1407_v56  ;;  %v1315_v59 = vsub.f32 %v1307_v57, %v1247_v42  ;;  %v1358_v61 = vsub.f32 %v1299_v55, %v2562_v47  ;;  %v1467_v63 = vunpack.c.l.b16 %v1415_v54 }
 0x27c   : > { %v1431_v10 = vunpack.c.l.bf16 %v1415_v54  ;;  %v1290_v40 = vpop.f32.mrf.mxu1 }
 0x27d   : > { %v1392_v13 = vsub.f32 %v1315_v59, %v2578_v2  ;;  %v1528_v14 = vunpack.c.l.b16 %v1423_v58  ;;  %v1439_v19 = vunpack.c.l.bf16 %v1423_v58  ;;  %v1472_v21 = vpack.c.b16 %v1467_v63, %v1466_v62 }
 0x27e   : > { %v1376_v60 = vmul.f32 %v3527_v0, %v1358_v61 }
 0x27f   : > { %v1400_v31 = vmul.f32 %v1392_v13, %v3527_v0  ;;  %v1533_v34 = vpack.c.b16 %v1528_v14, %v1527_v6  ;;  %v1447_v36 = vadd.f32 %v1439_v19, %v1431_v10  ;;  %2469 = vmatmul.msk.bf16.gmra.mxu2 %vm644_vm1, %v1472_v21 }
 0x280   : > { %v1182_v41 = vpop.f32.mrf.mxu3  ;;  %v1384_v48 = vsub.f32 %v1299_v55, %v1376_v60 }
 0x281   : > { %v1300_v44 = vsub.f32 %v1182_v41, %v1249_v33  ;;  %v1308_v35 = vsub.f32 %v1290_v40, %v1182_v41  ;;  %2473 = vmatmul.msk.bf16.gmra.mxu3 %vm644_vm1, %v1533_v34  ;;  %v1452_v46 = vpack.c.bf16 %v1447_v36, %v1446_v43  ;;  %v1408_v1 = vsub.f32 %v1315_v59, %v1400_v31 }
 0x282   : > { %v1416_v52 = vpack.c.bf16 %v1384_v48, %v1384_v48 }
 0x283   : > { %v1316_v49 = vsub.f32 %v1308_v35, %v1249_v33  ;;  %v1359_v42 = vsub.f32 %v1300_v44, %v2563_v26  ;;  %2477 = vmatmul.msk.bf16.gmra.mxu0 %vm644_vm1, %v1452_v46  ;;  %v1424_v15 = vpack.c.bf16 %v1408_v1, %v1408_v1 }
 0x284   : > { %v1468_v2 = vunpack.c.l.b16 %v1416_v52  ;;  %v1432_v55 = vunpack.c.l.bf16 %v1416_v52 }
 0x285   : > { %v1377_v0 = vmul.f32 %v3531_v3, %v1359_v42  ;;  %v1393_v51 = vsub.f32 %v1316_v49, %v2579_v45  ;;  %v1440_v54 = vunpack.c.l.bf16 %v1424_v15  ;;  %v1529_v57 = vunpack.c.l.b16 %v1424_v15 }
 0x287   : > { %v1385_v47 = vsub.f32 %v1300_v44, %v1377_v0  ;;  %v1401_v50 = vmul.f32 %v1393_v51, %v3531_v3  ;;  %v1448_v6 = vadd.f32 %v1440_v54, %v1432_v55 }
 0x289   : > { %v1409_v53 = vsub.f32 %v1316_v49, %v1401_v50  ;;  %v1417_v16 = vpack.c.bf16 %v1385_v47, %v1385_v47 }
 0x28b   : > { %v1425_v11 = vpack.c.bf16 %v1409_v53, %v1409_v53  ;;  %v1469_v56 = vunpack.c.l.b16 %v1417_v16  ;;  %v1433_v58 = vunpack.c.l.bf16 %v1417_v16  ;;  %v483_v53 = vpack.c.bf16 %v3374_v23, %v3372_v22 }
 0x28d   : > { %v1473_v59 = vpack.c.b16 %v1469_v56, %v1468_v2  ;;  %v1530_v61 = vunpack.c.l.b16 %v1425_v11  ;;  %v1441_v62 = vunpack.c.l.bf16 %v1425_v11  ;;  %2082 = vmatpush.bf16.msra.mxu3 %v483_v53 }
 0x28f   : > { %v1534_v63 = vpack.c.b16 %v1530_v61, %v1529_v57  ;;  %v1449_v7 = vadd.f32 %v1441_v62, %v1433_v58  ;;  %2470 = vmatmul.msk.bf16.gmra.mxu2 %vm644_vm1, %v1473_v59 }
 0x291   : > { %v1453_v10 = vpack.c.bf16 %v1449_v7, %v1448_v6  ;;  %2474 = vmatmul.msk.bf16.gmra.mxu3 %vm644_vm1, %v1534_v63 }
 0x293   : > { %2478 = vmatmul.msk.bf16.gmra.mxu0 %vm644_vm1, %v1453_v10 }
 0x2e0   : > { %v1597_v3 = vpop.f32.mrf.mxu0 }
 0x2e2   : > { %v1495_v13 = vpop.f32.mrf.mxu2 }
 0x2e3   : > { %v1625_v14 = vsub.f32 %v1597_v3, %v1495_v13 }
 0x2e4   : > { %v1556_v19 = vpop.f32.mrf.mxu3 }
 0x2e5   : > { %v1617_v20 = vadd.f32 %v1556_v19, %v1495_v13  ;;  %v1633_v21 = vadd.f32 %v1625_v14, %v1556_v19 }
 0x2e7   : > { %v2800_v26 = vpack.i.bf16 %v1633_v21, %v1617_v20 }
 0x2e8   : > { %v1599_v60 = vpop.f32.mrf.mxu0 }
 0x2e9   : > { %2801 = vxpose.xlu0.b32.start [1/2] (short) (narrow) %v2800_v26, 16 }
 0x2ea   : > { %v1497_v31 = vpop.f32.mrf.mxu2 }
 0x2eb   : > { %v1626_v33 = vsub.f32 %v1599_v60, %v1497_v31 }
 0x2ec   : > { %v1558_v34 = vpop.f32.mrf.mxu3 }
 0x2ed   : > { %v1618_v36 = vadd.f32 %v1558_v34, %v1497_v31  ;;  %v1634_v40 = vadd.f32 %v1626_v33, %v1558_v34 }
 0x2ef   : > { %v2802_v41 = vpack.i.bf16 %v1634_v40, %v1618_v36 }
 0x2f0   : > { %v1602_v43 = vpop.f32.mrf.mxu0 }
 0x2f1   : > { %2803 = vxpose.xlu0.b32.end [2/2] (short) (narrow) %v2802_v41, 16 }
 0x2f2   : > { %v1500_v44 = vpop.f32.mrf.mxu2 }
 0x2f3   : > { %v1627_v35 = vsub.f32 %v1602_v43, %v1500_v44 }
 0x2f4   : > { %v1561_v45 = vpop.f32.mrf.mxu3 }
 0x2f5   : > { %v1619_v46 = vadd.f32 %v1561_v45, %v1500_v44  ;;  %v1635_v48 = vadd.f32 %v1627_v35, %v1561_v45 }
 0x2f7   : > { %v2814_v1 = vpack.i.bf16 %v1635_v48, %v1619_v46 }
 0x2f8   : > { %v1604_v49 = vpop.f32.mrf.mxu0 }
 0x2f9   : > { %2815 = vxpose.xlu0.b32.start [1/2] (short) (narrow) %v2814_v1, 16 }
 0x2fa   : > { %v1502_v42 = vpop.f32.mrf.mxu2 }
 0x2fb   : > { %v1628_v0 = vsub.f32 %v1604_v49, %v1502_v42 }
 0x2fc   : > { %v1563_v51 = vpop.f32.mrf.mxu3 }
 0x2fd   : > { %v1620_v52 = vadd.f32 %v1563_v51, %v1502_v42  ;;  %v1636_v15 = vadd.f32 %v1628_v0, %v1563_v51 }
 0x2ff   : > { %v2816_v47 = vpack.i.bf16 %v1636_v15, %v1620_v52 }
 0x300   : > { %v1607_v50 = vpop.f32.mrf.mxu0 }
 0x301   : > { %2817 = vxpose.xlu0.b32.end [2/2] (short) (narrow) %v2816_v47, 16 }
 0x302   : > { %v1505_v16 = vpop.f32.mrf.mxu2 }
 0x303   : > { %v1629_v11 = vsub.f32 %v1607_v50, %v1505_v16 }
 0x304   : > { %v1566_v2 = vpop.f32.mrf.mxu3 }
 0x305   : > { %v1621_v56 = vadd.f32 %v1566_v2, %v1505_v16  ;;  %v1637_v54 = vadd.f32 %v1629_v11, %v1566_v2 }
 0x307   : > { %v2828_v55 = vpack.i.bf16 %v1637_v54, %v1621_v56 }
 0x308   : > { %v1609_v57 = vpop.f32.mrf.mxu0 }
 0x309   : > { %2829 = vxpose.xlu0.b32.start [1/2] (short) (narrow) %v2828_v55, 16 }
 0x30a   : > { %v1507_v58 = vpop.f32.mrf.mxu2 }
 0x30b   : > { %v1630_v59 = vsub.f32 %v1609_v57, %v1507_v58 }
 0x30c   : > { %v1568_v61 = vpop.f32.mrf.mxu3 }
 0x30d   : > { %v1622_v62 = vadd.f32 %v1568_v61, %v1507_v58  ;;  %v1638_v63 = vadd.f32 %v1630_v59, %v1568_v61 }
 0x30f   : > { %v2830_v6 = vpack.i.bf16 %v1638_v63, %v1622_v62 }
 0x310   : > { %v1612_v7 = vpop.f32.mrf.mxu0 }
 0x311   : > { %2831 = vxpose.xlu0.b32.end [2/2] (short) (narrow) %v2830_v6, 16 }
 0x312   : > { %v1510_v10 = vpop.f32.mrf.mxu2 }
 0x313   : > { %v1631_v3 = vsub.f32 %v1612_v7, %v1510_v10 }
 0x314   : > { %v1571_v22 = vpop.f32.mrf.mxu3 }
 0x315   : > { %v1623_v23 = vadd.f32 %v1571_v22, %v1510_v10  ;;  %v1639_v13 = vadd.f32 %v1631_v3, %v1571_v22 }
 0x317   : > { %v2842_v14 = vpack.i.bf16 %v1639_v13, %v1623_v23 }
 0x318   : > { %v1614_v19 = vpop.f32.mrf.mxu0 }
 0x319   : > { %2843 = vxpose.xlu0.b32.start [1/2] (short) (narrow) %v2842_v14, 16 }
 0x31a   : > { %v1512_v20 = vpop.f32.mrf.mxu2 }
 0x31b   : > { %v1632_v21 = vsub.f32 %v1614_v19, %v1512_v20 }
 0x31c   : > { %v1573_v26 = vpop.f32.mrf.mxu3 }
 0x31d   : > { %v1624_v60 = vadd.f32 %v1573_v26, %v1512_v20  ;;  %v1640_v31 = vadd.f32 %v1632_v21, %v1573_v26 }
 0x31f   : > { %v2844_v33 = vpack.i.bf16 %v1640_v31, %v1624_v60 }
 0x321   : > { %2845 = vxpose.xlu0.b32.end [2/2] (short) (narrow) %v2844_v33, 16 }
 0x388   : > { %2856 = vset.pattern.permute.xlu0 %v3069_v12 }
 0x38d   : > { %v2804_v34 = vpop.trf.xlu0 }
 0x38e   : > { %v2808_v36 = vunpack.i.h.bf16 %v2804_v34  ;;  %v2805_v40 = vunpack.i.l.bf16 %v2804_v34 }
 0x390   : > { %v1905_v41 = vpack.c.bf16 %v2808_v36, %v2808_v36  ;;  %v1897_v43 = vpack.c.bf16 %v2805_v40, %v2805_v40 }
 0x392   : > { %v1921_v1 = vunpack.c.l.bf16 %v1905_v41  ;;  %v2010_v49 = vunpack.c.l.b16 %v1905_v41  ;;  %v1913_v42 = vunpack.c.l.bf16 %v1897_v43  ;;  %v1949_v0 = vunpack.c.l.b16 %v1897_v43 }
 0x394   : > { %v1929_v16 = vadd.f32 %v1921_v1, %v1913_v42 }
 0x395   : > { %v2809_v44 = vpop.trf.xlu0 }
 0x396   : > { %v2813_v35 = vunpack.i.h.bf16 %v2809_v44  ;;  %v2810_v45 = vunpack.i.l.bf16 %v2809_v44 }
 0x398   : > { %v1906_v46 = vpack.c.bf16 %v2813_v35, %v2813_v35  ;;  %v1898_v48 = vpack.c.bf16 %v2810_v45, %v2810_v45 }
 0x39a   : > { %v1922_v51 = vunpack.c.l.bf16 %v1906_v46  ;;  %v2011_v52 = vunpack.c.l.b16 %v1906_v46  ;;  %v1914_v15 = vunpack.c.l.bf16 %v1898_v48  ;;  %v1950_v47 = vunpack.c.l.b16 %v1898_v48 }
 0x39c   : > { %v1930_v50 = vadd.f32 %v1922_v51, %v1914_v15  ;;  %v1957_v12 = vpack.c.b16 %v1950_v47, %v1949_v0  ;;  %v2018_v53 = vpack.c.b16 %v2011_v52, %v2010_v49 }
 0x39d   : > { %v2818_v11 = vpop.trf.xlu0 }
 0x39e   : > { %2479 = vmatmul.msk.bf16.vlgmr.msra.gmra.mxu1 %vm644_vm1, %v1957_v12  ;;  %2483 = vmatmul.msk.bf16.vlgmr.msra.gmra.mxu2 %vm644_vm1, %v2018_v53  ;;  %v1937_v2 = vpack.c.bf16 %v1930_v50, %v1929_v16  ;;  %v2822_v56 = vunpack.i.h.bf16 %v2818_v11  ;;  %v2819_v54 = vunpack.i.l.bf16 %v2818_v11 }
 0x3a0   : > { %2487 = vmatmul.msk.bf16.vlgmr.msra.gmra.mxu3 %vm644_vm1, %v1937_v2  ;;  %v1907_v55 = vpack.c.bf16 %v2822_v56, %v2822_v56  ;;  %v1899_v57 = vpack.c.bf16 %v2819_v54, %v2819_v54 }
 0x3a2   : > { %v1951_v6 = vunpack.c.l.b16 %v1899_v57  ;;  %v2012_v7 = vunpack.c.l.b16 %v1907_v55  ;;  %v1915_v10 = vunpack.c.l.bf16 %v1899_v57  ;;  %v1923_v3 = vunpack.c.l.bf16 %v1907_v55 }
 0x3a4   : > { %v1931_v60 = vadd.f32 %v1923_v3, %v1915_v10 }
 0x3a5   : > { %v2823_v58 = vpop.trf.xlu0 }
 0x3a6   : > { %v2827_v59 = vunpack.i.h.bf16 %v2823_v58  ;;  %v2824_v61 = vunpack.i.l.bf16 %v2823_v58 }
 0x3a8   : > { %v1908_v62 = vpack.c.bf16 %v2827_v59, %v2827_v59  ;;  %v1900_v63 = vpack.c.bf16 %v2824_v61, %v2824_v61 }
 0x3aa   : > { %v1952_v22 = vunpack.c.l.b16 %v1900_v63  ;;  %v2013_v23 = vunpack.c.l.b16 %v1908_v62  ;;  %v1916_v13 = vunpack.c.l.bf16 %v1900_v63  ;;  %v1924_v14 = vunpack.c.l.bf16 %v1908_v62 }
 0x3ac   : > { %v1958_v19 = vpack.c.b16 %v1952_v22, %v1951_v6  ;;  %v2019_v20 = vpack.c.b16 %v2013_v23, %v2012_v7  ;;  %v1932_v21 = vadd.f32 %v1924_v14, %v1916_v13 }
 0x3ad   : > { %v2832_v26 = vpop.trf.xlu0 }
 0x3ae   : > { %2480 = vmatmul.msk.bf16.gmra.mxu1 %vm644_vm1, %v1958_v19  ;;  %2484 = vmatmul.msk.bf16.gmra.mxu2 %vm644_vm1, %v2019_v20  ;;  %v1938_v31 = vpack.c.bf16 %v1932_v21, %v1931_v60  ;;  %v2836_v33 = vunpack.i.h.bf16 %v2832_v26  ;;  %v2833_v34 = vunpack.i.l.bf16 %v2832_v26 }
 0x3b0   : > { %2488 = vmatmul.msk.bf16.gmra.mxu3 %vm644_vm1, %v1938_v31  ;;  %v1909_v36 = vpack.c.bf16 %v2836_v33, %v2836_v33  ;;  %v1901_v40 = vpack.c.bf16 %v2833_v34, %v2833_v34 }
 0x3b2   : > { %v1953_v46 = vunpack.c.l.b16 %v1901_v40  ;;  %v2014_v48 = vunpack.c.l.b16 %v1909_v36  ;;  %v1917_v1 = vunpack.c.l.bf16 %v1901_v40  ;;  %v1925_v49 = vunpack.c.l.bf16 %v1909_v36 }
 0x3b4   : > { %v1933_v53 = vadd.f32 %v1925_v49, %v1917_v1 }
 0x3b5   : > { %v2837_v41 = vpop.trf.xlu0 }
 0x3b6   : > { %v2841_v43 = vunpack.i.h.bf16 %v2837_v41  ;;  %v2838_v44 = vunpack.i.l.bf16 %v2837_v41 }
 0x3b8   : > { %v1910_v35 = vpack.c.bf16 %v2841_v43, %v2841_v43  ;;  %v1902_v45 = vpack.c.bf16 %v2838_v44, %v2838_v44 }
 0x3ba   : > { %v1954_v42 = vunpack.c.l.b16 %v1902_v45  ;;  %v2015_v0 = vunpack.c.l.b16 %v1910_v35  ;;  %v1918_v51 = vunpack.c.l.bf16 %v1902_v45  ;;  %v1926_v52 = vunpack.c.l.bf16 %v1910_v35 }
 0x3bc   : > { %v1959_v15 = vpack.c.b16 %v1954_v42, %v1953_v46  ;;  %v2020_v47 = vpack.c.b16 %v2015_v0, %v2014_v48  ;;  %v1934_v50 = vadd.f32 %v1926_v52, %v1918_v51 }
 0x3bd   : > { %v2846_v12 = vpop.trf.xlu0 }
 0x3be   : > { %2481 = vmatmul.msk.bf16.gmra.mxu1 %vm644_vm1, %v1959_v15  ;;  %2485 = vmatmul.msk.bf16.gmra.mxu2 %vm644_vm1, %v2020_v47  ;;  %v1939_v16 = vpack.c.bf16 %v1934_v50, %v1933_v53  ;;  %v2850_v11 = vunpack.i.h.bf16 %v2846_v12  ;;  %v2847_v2 = vunpack.i.l.bf16 %v2846_v12 }
 0x3c0   : > { %2489 = vmatmul.msk.bf16.gmra.mxu3 %vm644_vm1, %v1939_v16  ;;  %v1911_v56 = vpack.c.bf16 %v2850_v11, %v2850_v11  ;;  %v1903_v54 = vpack.c.bf16 %v2847_v2, %v2847_v2 }
 0x3c2   : > { %v1919_v62 = vunpack.c.l.bf16 %v1903_v54  ;;  %v1927_v63 = vunpack.c.l.bf16 %v1911_v56  ;;  %v1955_v6 = vunpack.c.l.b16 %v1903_v54  ;;  %v2016_v7 = vunpack.c.l.b16 %v1911_v56 }
 0x3c4   : > { %v1935_v19 = vadd.f32 %v1927_v63, %v1919_v62 }
 0x3c5   : > { %v2851_v55 = vpop.trf.xlu0 }
 0x3c6   : > { %v2855_v57 = vunpack.i.h.bf16 %v2851_v55  ;;  %v2852_v58 = vunpack.i.l.bf16 %v2851_v55 }
 0x3c8   : > { %v1912_v59 = vpack.c.bf16 %v2855_v57, %v2855_v57  ;;  %v1904_v61 = vpack.c.bf16 %v2852_v58, %v2852_v58 }
 0x3ca   : > { %v1928_v10 = vunpack.c.l.bf16 %v1912_v59  ;;  %v1920_v3 = vunpack.c.l.bf16 %v1904_v61  ;;  %v1956_v22 = vunpack.c.l.b16 %v1904_v61  ;;  %v2017_v23 = vunpack.c.l.b16 %v1912_v59 }
 0x3cc   : > { %v1960_v13 = vpack.c.b16 %v1956_v22, %v1955_v6  ;;  %v2021_v14 = vpack.c.b16 %v2017_v23, %v2016_v7  ;;  %v1936_v20 = vadd.f32 %v1928_v10, %v1920_v3 }
 0x3ce   : > { %2482 = vmatmul.msk.bf16.gmra.mxu1 %vm644_vm1, %v1960_v13  ;;  %2486 = vmatmul.msk.bf16.gmra.mxu2 %vm644_vm1, %v2021_v14  ;;  %v1940_v21 = vpack.c.bf16 %v1936_v20, %v1935_v19 }
 0x3d0   : > { %2490 = vmatmul.msk.bf16.gmra.mxu3 %vm644_vm1, %v1940_v21 }
 0x41b   : > { %v1982_v26 = vpop.f32.mrf.mxu1 }
 0x421   : > { %v2043_v60 = vpop.f32.mrf.mxu2 }
 0x422   : > { %v2104_v15 = vadd.f32 %v2043_v60, %v1982_v26 }
 0x423   : > { %v1984_v31 = vpop.f32.mrf.mxu1  ;;  %v2084_v33 = vpop.f32.mrf.mxu3 }
 0x424   : > { %v2112_v1 = vsub.f32 %v2084_v33, %v1982_v26  ;;  %v2130_v54 = vmul.f32 %v3367_v17, %v2104_v15  ;;  %v2183_v55 = vmul.f32 %v3376_v24, %v2104_v15 }
 0x426   : > { %v2120_v0 = vadd.f32 %v2112_v1, %v2043_v60 }
 0x428   : > { %v2138_v53 = vmul.f32 %v3376_v24, %v2120_v0  ;;  %v2175_v16 = vmul.f32 %v3367_v17, %v2120_v0 }
 0x429   : > { %v2045_v34 = vpop.f32.mrf.mxu2 }
 0x42a   : > { %v2105_v57 = vadd.f32 %v2045_v34, %v1984_v31  ;;  %v2146_v62 = vadd.f32 %v2138_v53, %v2130_v54  ;;  %v2191_v63 = vsub.f32 %v2175_v16, %v2183_v55 }
 0x42b   : > { %v1987_v36 = vpop.f32.mrf.mxu1  ;;  %v2086_v40 = vpop.f32.mrf.mxu3 }
 0x42c   : > { %v2113_v47 = vsub.f32 %v2086_v40, %v1984_v31  ;;  %v2131_v17 = vmul.f32 %v3369_v18, %v2105_v57  ;;  %v2154_v31 = vsel %vm644_vm1, %v2146_v62, 0.0  ;;  %v2184_v33 = vmul.f32 %v3378_v25, %v2105_v57 }
 0x42d   : > { %v2199_v40 = vsel %vm644_vm1, %v2191_v63, 0.0 }
 0x42e   : > { %v2121_v58 = vadd.f32 %v2113_v47, %v2045_v34 }
 0x430   : > { %v2139_v24 = vmul.f32 %v3378_v25, %v2121_v58  ;;  %v2176_v13 = vmul.f32 %v3369_v18, %v2121_v58 }
 0x431   : > { %v2048_v41 = vpop.f32.mrf.mxu2 }
 0x432   : > { %v2106_v11 = vadd.f32 %v2048_v41, %v1987_v36 }
 0x433   : > { %v1989_v43 = vpop.f32.mrf.mxu1  ;;  %v2089_v44 = vpop.f32.mrf.mxu3 }
 0x434   : > { %v2114_v42 = vsub.f32 %v2089_v44, %v1987_v36  ;;  %v2132_v10 = vmul.f32 %v3389_v32, %v2106_v11  ;;  %v2185_v14 = vmul.f32 %v3401_v38, %v2106_v11 }
 0x436   : > { %v2122_v12 = vadd.f32 %v2114_v42, %v2048_v41 }
 0x438   : > { %v2140_v59 = vmul.f32 %v3401_v38, %v2122_v12  ;;  %v2177_v6 = vmul.f32 %v3389_v32, %v2122_v12 }
 0x439   : > { %v2050_v35 = vpop.f32.mrf.mxu2 }
 0x43a   : > { %v2148_v20 = vadd.f32 %v2140_v59, %v2132_v10  ;;  %v2107_v21 = vadd.f32 %v2050_v35, %v1989_v43  ;;  %v2193_v34 = vsub.f32 %v2177_v6, %v2185_v14  ;;  %v2128_v6 = vld [vmem:[%s3344_s13] sm:$0xff]  ;;  %v2491_v10 = vld [vmem:[%s3344_s13 + $0x10] sm:$0xff] }
 0x43b   : > { %v2091_v45 = vpop.f32.mrf.mxu3  ;;  %v1992_v46 = vpop.f32.mrf.mxu1 }
 0x43c   : > { %v2115_v7 = vsub.f32 %v2091_v45, %v1989_v43  ;;  %v2147_v45 = vadd.f32 %v2139_v24, %v2131_v17  ;;  %v2186_v1 = vmul.f32 %v3403_v39, %v2107_v21  ;;  %v2200_v25 = vsel %vm644_vm1, %v2193_v34, 0.0 }
 0x43e   : > { %v2123_v36 = vadd.f32 %v2115_v7, %v2050_v35 }
 0x440   : > { %v2141_v35 = vmul.f32 %v3403_v39, %v2123_v36  ;;  %v2178_v42 = vmul.f32 %v3399_v37, %v2123_v36 }
 0x441   : > { %v2053_v48 = vpop.f32.mrf.mxu2 }
 0x442   : > { %v2108_v61 = vadd.f32 %v2053_v48, %v1992_v46  ;;  %v2194_v55 = vsub.f32 %v2178_v42, %v2186_v1 }
 0x443   : > { %v2094_v49 = vpop.f32.mrf.mxu3  ;;  %v1994_v51 = vpop.f32.mrf.mxu1 }
 0x444   : > { %v2116_v52 = vsub.f32 %v2094_v49, %v1992_v46  ;;  %v2134_v26 = vmul.f32 %v3426_v27, %v2108_v61  ;;  %v2187_v32 = vmul.f32 %v3430_v29, %v2108_v61  ;;  %v2192_v46 = vsub.f32 %v2176_v13, %v2184_v33 }
 0x445   : > { %v2207_v14 = vsel %vm644_vm1, %v2194_v55, 0.0 }
 0x446   : > { %v2124_v2 = vadd.f32 %v2116_v52, %v2053_v48  ;;  %v2206_v24 = vsel %vm644_vm1, %v2192_v46, 0.0 }
 0x448   : > { %v2142_v3 = vmul.f32 %v3430_v29, %v2124_v2  ;;  %v2179_v22 = vmul.f32 %v3426_v27, %v2124_v2  ;;  %v2155_v27 = vsel %vm644_vm1, %v2148_v20, 0.0  ;;  %v2133_v29 = vmul.f32 %v3399_v37, %v2107_v21 }
 0x449   : > { %v2055_v50 = vpop.f32.mrf.mxu2  ;;  %v2156_v39 = vadd.f32 %v2155_v27, %v2154_v31  ;;  %v2201_v37 = vadd.f32 %v2200_v25, %v2199_v40  ;;  %v2208_v40 = vadd.f32 %v2207_v14, %v2206_v24 }
 0x44a   : > { %v2150_v41 = vadd.f32 %v2142_v3, %v2134_v26  ;;  %v2195_v18 = vsub.f32 %v2179_v22, %v2187_v32  ;;  %v2109_v49 = vadd.f32 %v2055_v50, %v1994_v51  ;;  %v2149_v54 = vadd.f32 %v2141_v35, %v2133_v29 }
 0x44b   : > { %v2096_v56 = vpop.f32.mrf.mxu3  ;;  %v1997_v60 = vpop.f32.mrf.mxu1  ;;  %v2161_v22 = vsel %vm644_vm1, %v2147_v45, 0.0  ;;  %v2492_v45 = vld [vmem:[%s3344_s13 + $0x18] sm:$0xff] }
 0x44c   : > { %v2117_v23 = vsub.f32 %v2096_v56, %v1994_v51  ;;  %v2157_v52 = vsel %vm644_vm1, %v2150_v41, 0.0  ;;  %v2202_v15 = vsel %vm644_vm1, %v2195_v18, 0.0  ;;  %v2135_v11 = vmul.f32 %v3428_v28, %v2109_v49 }
 0x44d   : > { %v2188_v2 = vmul.f32 %v3432_v30, %v2109_v49  ;;  %v2158_v59 = vadd.f32 %v2157_v52, %v2156_v39  ;;  %v2203_v61 = vadd.f32 %v2202_v15, %v2201_v37  ;;  %v2162_v13 = vsel %vm644_vm1, %v2149_v54, 0.0 }
 0x44e   : > { %v2125_v44 = vadd.f32 %v2117_v23, %v2055_v50  ;;  %v2163_v36 = vadd.f32 %v2162_v13, %v2161_v22 }
 0x450   : > { %v2143_v47 = vmul.f32 %v3432_v30, %v2125_v44  ;;  %v2180_v12 = vmul.f32 %v3428_v28, %v2125_v44 }
 0x451   : > { %v2058_v19 = vpop.f32.mrf.mxu2 }
 0x452   : > { %v2110_v43 = vadd.f32 %v2058_v19, %v1997_v60  ;;  %v2151_v62 = vadd.f32 %v2143_v47, %v2135_v11  ;;  %v2196_v63 = vsub.f32 %v2180_v12, %v2188_v2 }
 0x453   : > { %v2099_v38 = vpop.f32.mrf.mxu3 }
 0x454   : > { %v2118_v48 = vsub.f32 %v2099_v38, %v1997_v60  ;;  %v2136_v53 = vmul.f32 %v3455_v4, %v2110_v43  ;;  %v2189_v16 = vmul.f32 %v3459_v8, %v2110_v43  ;;  %v2164_v20 = vsel %vm644_vm1, %v2151_v62, 0.0 }
 0x455   : > { %v2209_v21 = vsel %vm644_vm1, %v2196_v63, 0.0  ;;  %v2165_v44 = vadd.f32 %v2164_v20, %v2163_v36 }
 0x456   : > { %v2126_v0 = vadd.f32 %v2118_v48, %v2058_v19  ;;  %v2210_v38 = vadd.f32 %v2209_v21, %v2208_v40 }
 0x458   : > { %v2144_v51 = vmul.f32 %v3459_v8, %v2126_v0  ;;  %v2181_v50 = vmul.f32 %v3455_v4, %v2126_v0  ;;  %v1999_v8 = vpop.f32.mrf.mxu1 }
 0x459   : > { %v2060_v56 = vpop.f32.mrf.mxu2 }
 0x45a   : > { %v2152_v57 = vadd.f32 %v2144_v51, %v2136_v53  ;;  %v2197_v58 = vsub.f32 %v2181_v50, %v2189_v16  ;;  %v2111_v3 = vadd.f32 %v2060_v56, %v1999_v8 }
 0x45b   : > { %v2101_v4 = vpop.f32.mrf.mxu3 }
 0x45c   : > { %v2159_v7 = vsel %vm644_vm1, %v2152_v57, 0.0  ;;  %v2204_v28 = vsel %vm644_vm1, %v2197_v58, 0.0  ;;  %v2119_v30 = vsub.f32 %v2101_v4, %v1999_v8  ;;  %v2137_v60 = vmul.f32 %v3457_v5, %v2111_v3 }
 0x45d   : > { %v2160_v23 = vadd.f32 %v2159_v7, %v2158_v59  ;;  %v2205_v17 = vadd.f32 %v2204_v28, %v2203_v61  ;;  %v2190_v31 = vmul.f32 %v3461_v9, %v2111_v3 }
 0x45e   : > { %v2127_v19 = vadd.f32 %v2119_v30, %v2060_v56 }
 0x45f   : > { %v2168_v26 = vadd.f32 %v2160_v23, %v2128_v6  ;;  %v2213_v32 = vadd.f32 %v2491_v10, %v2205_v17 }
 0x460   : > { %v2145_v33 = vmul.f32 %v3461_v9, %v2127_v19  ;;  %v2182_v34 = vmul.f32 %v3457_v5, %v2127_v19  ;;  %v2129_v9 = vld [vmem:[%s3344_s13 + $0x8] sm:$0xff] }
 0x461   : > { %2170 = vst.msk [vmem:[%s3344_s13] sm:$0xff] %vm644_vm1, %v2168_v26 }
 0x462   : > { %2493 = vst.msk [vmem:[%s3344_s13 + $0x10] sm:$0xff] %vm644_vm1, %v2213_v32  ;;  %v2153_v41 = vadd.f32 %v2145_v33, %v2137_v60  ;;  %v2198_v18 = vsub.f32 %v2182_v34, %v2190_v31 }
 0x464   : > { %v2166_v5 = vsel %vm644_vm1, %v2153_v41, 0.0  ;;  %v2211_v46 = vsel %vm644_vm1, %v2198_v18, 0.0 }
 0x465   : > { %v2167_v43 = vadd.f32 %v2166_v5, %v2165_v44  ;;  %v2212_v48 = vadd.f32 %v2211_v46, %v2210_v38 }
 0x467   : > { %v2169_v27 = vadd.f32 %v2167_v43, %v2129_v9  ;;  %v2214_v29 = vadd.f32 %v2492_v45, %v2212_v48 }
 0x469   : > { %2171 = vst.msk [vmem:[%s3344_s13 + $0x8] sm:$0xff] %vm644_vm1, %v2169_v27 }
 0x46a   : > { %2494 = vst.msk [vmem:[%s3344_s13 + $0x18] sm:$0xff] %vm644_vm1, %v2214_v29 }
 0x46b   : > { %2942 = shalt.err (!%p2939_p11)
}
 0x46c   : > { %s3070_s12 = smov 128   ;;  %s3071_s13 = smov 8  }
 0x46d   : > { %2619 = dma.vmem_to_hbm [thread:$0]  (%p3230_p7), %s2231_s9, 512, %s2233_s15, %s2218_s17, %s3070_s12, %s3070_s12, %s3071_s13  }
 0x46e PF: > { %s3740_s1 = sld [smem:[#allocation22_spill]]  ;;  %p2631_p1 = scmp.ge.s32.totalorder %s3049_s7, 2 }
 0x470   : > { %p2626_p9 = pnand %p2631_p1, %p3238_p10 }
 0x472   : > { %p2627_p4 = pneg %p2626_p9 }
 0x474   : > { %s2247_s8 = sand.u32 1, %s3740_s1  }
 0x475   : > { %s2248_s11 = scalar_lea.sflag [#allocation4], %s2247_s8 }
 0x476   : > { %3004 = dma.done.wait (%p2627_p4), %s2248_s11, 512  }
 0x477   : > { %3006 = vsyncadd (%p2627_p4), %s2248_s11, 4294966784  ;;  %s26_s7 = sadd.s32 1, %s3049_s7   ;;  %s3742_s6 = sld [smem:[#allocation27_spill]] }
 0x478   : > { %p23_p3 = scmp.ge.s32.totalorder %s26_s7, 6   ;;  %s3743_s27 = sld [smem:[#allocation26_spill]] }
 0x479   : > { %s3744_s9 = sld [smem:[#allocation24_spill]]  ;;  %s3746_s21 = smov %s3013_s22 }
 0x47a   : > { %s3745_s15 = sld [smem:[#allocation25_spill]]  ;;  %s3747_s22 = smov %s3017_s23 }
 0x47b   : > { %s3749_s24 = smov %s3025_s25  ;;  %s3750_s25 = smov %s3029_s26 }
 0x47c   : > { %s3753_s28 = smov %s3045_s30  ;;  %25 = sbr.rel (!%p23_p3) target bundleno = 17 (0x11), region = 138 }
 0x47d   : > { %s3748_s23 = smov %s3742_s6 }
 0x47e   : > { %s3751_s26 = smov %s3743_s27  ;;  %s3752_s27 = smov %s3041_s29 }
 0x47f   : > { %s3754_s29 = smov %s3744_s9 }
 0x480   : > { %s3755_s30 = smov %s3745_s15 }
 0x481   :  { %2254 = vsyncpa [#allocation3], 1 }
 0x482   :  { %2256 = vsyncpa [#allocation3 + $0x1], 1 }
 0x483   :  { %2257 = vsyncpa [#allocation6], 1 }
 0x484   :  { %2259 = vsyncpa [#allocation6 + $0x1], 1 }
 0x485   :  { %2260 = vsyncpa [#allocation9], 1 }
 0x486   :  { %2262 = vsyncpa [#allocation9 + $0x1], 1 }
 0x487   :  { %2263 = vsyncpa [#allocation4], 1 }
 0x488   :  { %2265 = vsyncpa [#allocation4 + $0x1], 1 }

</bundles_post_ra>
